<compile_context>
chip_gen: v5e
topology: v5e:2x2
jax: 0.10.0
libtpu: 0.0.40
codegen_flags: <defaults>
</compile_context>

<pallas_src>
import functools

import jax
import jax.numpy as jnp
import numpy as np
from jax.experimental import pallas as pl
from jax.experimental.pallas import tpu as pltpu


# ----------------------------- Pallas kernel -----------------------------

def _block_kernel(x_ref, s1_ref, b1_ref, s2_ref, b2_ref, s3_ref, b3_ref,
                  w1_ref, w2_ref, o_ref, yp_ref, pat_ref, *, H, W, C, NIMG):
    """Fused BasicBlock forward for one (branch, image-block) grid step.

    Layouts (per grid step; nb = NIMG images per step):
      x_ref  : (1, nb, C, H*W) bf16  input, channels on sublanes, H*W on lanes
      s1_ref : (1, C, 1) f32         bn1/bn1min scale
      b1_ref : (1, C, 1) f32         bn1/bn1min shift
      s2_ref : (1, C, 1) f32         sign * bn2 scale   (relu/nrelu sign fold)
      b2_ref : (1, C, 1) f32         sign * bn2 shift
      s3_ref : (1, C, 1) f32         sign * gate * bn3 scale
      b3_ref : (1, C, 1) f32         gate * bn3 shift
      w1_ref : (C, 9*C) bf16         conv1 raw im2col weight (branch-shared)
      w2_ref : (C, 9*C) bf16         conv2 raw im2col weight (branch-shared)
      o_ref  : (1, nb, C, H*W) f32   output
      yp_ref : (nb*C, H*W + 2*(W+1)) bf16 VMEM zero-haloed line buffer
      pat_ref: (9*C, nb*H*W)         bf16 VMEM im2col patch matrix
    """
    HW = H * W
    LB = HW + 2 * (W + 1)

    # Column-edge keep masks generated in-kernel (no HBM mask input).
    col = jax.lax.broadcasted_iota(jnp.int32, (1, HW), 1) % W
    keep_l = (col > 0).astype(jnp.bfloat16)          # kw==0 invalid at col==0
    keep_r = (col < (W - 1)).astype(jnp.bfloat16)    # kw==2 invalid at col==W-1

    # Refresh the per-image zero halos (interior is overwritten before use).
    zero_halo = jnp.zeros((C, W + 1), jnp.bfloat16)
    for i in range(NIMG):
        r0 = i * C
        yp_ref[r0:r0 + C, 0:W + 1] = zero_halo
        yp_ref[r0:r0 + C, W + 1 + HW:LB] = zero_halo

    def conv3x3(get_img, w_ref):
        # get_img(i) -> (C, HW) bf16 activation of image i.
        for i in range(NIMG):
            yp_ref[i * C:(i + 1) * C, W + 1:W + 1 + HW] = get_img(i)
        # TODO(synk): per-kh accumulating matmuls (K=3C) would cut pat stores
        # 3x on v5e; at small C the kernel is DMA/overhead bound so the single
        # big matmul is kept.
        for kh in range(3):
            for kw in range(3):
                row = (kh * 3 + kw) * C
                off = kh * W + kw
                for i in range(NIMG):
                    t = yp_ref[i * C:(i + 1) * C, off:off + HW]
                    if kw == 0:
                        t = t * keep_l
                    elif kw == 2:
                        t = t * keep_r
                    pat_ref[row:row + C, i * HW:(i + 1) * HW] = t
        # One bf16 MXU matmul over all images: (C, 9C) x (9C, nb*HW) -> f32.
        return jnp.dot(w_ref[...], pat_ref[...],
                       preferred_element_type=jnp.float32)

    s1, b1 = s1_ref[0], b1_ref[0]                    # (C, 1)

    def bn1_img(i):
        xi = x_ref[0, i].astype(jnp.float32)         # (C, HW)
        return (xi * s1 + b1).astype(jnp.bfloat16)

    # conv1 -> bn2 (+ relu/nrelu via sign fold) as a post-matmul row affine.
    h = jnp.maximum(conv3x3(bn1_img, w1_ref) * s2_ref[0] + b2_ref[0], 0.0)
    h = h.astype(jnp.bfloat16)                       # (C, nb*HW)

    # conv2 -> gate*bn3 (+ sign fold) -> zero-channel-padded identity add.
    out = conv3x3(lambda i: h[:, i * HW:(i + 1) * HW], w2_ref)
    out = out * s3_ref[0] + b3_ref[0]
    for i in range(NIMG):
        o_ref[0, i] = (out[:, i * HW:(i + 1) * HW]
                       + x_ref[0, i].astype(jnp.float32)).astype(o_ref.dtype)


# ----------------------------- wrapper -----------------------------

def _im2col_weight(w_oihw, c_in_pad):
    """(O, I, 3, 3) OIHW -> (O, 9*c_in_pad) bf16 matching the kernel tap order."""
    o, i, _, _ = w_oihw.shape
    if c_in_pad > i:
        w_oihw = jnp.pad(w_oihw, ((0, 0), (0, c_in_pad - i), (0, 0), (0, 0)))
    return (jnp.transpose(w_oihw, (0, 2, 3, 1))
            .reshape(o, 9 * c_in_pad).astype(jnp.bfloat16))


def _prep_x(x_nchw, c_pad):
    n, c, h, w = x_nchw.shape
    x = x_nchw.astype(jnp.float32).reshape(n, c, h * w)
    if c_pad > c:
        x = jnp.pad(x, ((0, 0), (0, c_pad - c), (0, 0)))
    return x.astype(jnp.bfloat16)


def _pick_nb(n, c, hw, w, budget_bytes=24 * 1024 * 1024, cap=16):
    """Images per grid step: biggest divisor of n under a per-step VMEM budget."""
    per_img = (9 * c * hw * 2                  # im2col patches (bf16)
               + c * (hw + 2 * (w + 1)) * 2    # line buffer (bf16)
               + 2 * c * hw * 2                # double-buffered bf16 input block
               + 2 * c * hw * 4                # double-buffered f32 output block
               + 3 * c * hw * 4)               # f32 intermediates headroom
    nb = max(1, min(n, cap, budget_bytes // max(per_img, 1)))
    while n % nb:
        nb -= 1
    return nb


@functools.partial(jax.jit, static_argnames=("droprate",))
def basic_block_forward(xmax_nchw, xmin_nchw, p, droprate=0.0):
    """Eval-mode BasicBlock forward.  Inputs/outputs NCHW (PyTorch convention)."""
    N, Cin, H, W = xmax_nchw.shape
    planes = p["w1_oihw"].shape[0]
    assert Cin <= planes, "PyramidNet BasicBlock expects inplanes <= planes"
    C = planes
    HW = H * W

    # shake: eval mode => deterministic expectation (see TODO at top of file).
    gate = 0.5 * (1.0 - droprate)
    sgn = jnp.array([1.0, -1.0], jnp.float32)        # relu vs nrelu sign fold

    # ---- inputs: stack branches, flatten spatial, pad channels, cast bf16 ----
    x_all = jnp.stack([_prep_x(xmax_nchw, C), _prep_x(xmin_nchw, C)], axis=0)

    # ---- bn1 / bn1min (pre-conv, applied in-kernel) ----
    s1 = jnp.stack([p["bn1_scale"], p["bn1min_scale"]])
    b1 = jnp.stack([p["bn1_shift"], p["bn1min_shift"]])
    if C > Cin:
        s1 = jnp.pad(s1, ((0, 0), (0, C - Cin)), constant_values=1.0)
        b1 = jnp.pad(b1, ((0, 0), (0, C - Cin)))
    s1 = s1.reshape(2, C, 1)
    b1 = b1.reshape(2, C, 1)

    # ---- branch-independent raw im2col conv weights (bf16 for the MXU) ----
    w1m = _im2col_weight(p["w1_oihw"], C)            # (C, 9*C)
    w2m = _im2col_weight(p["w2_oihw"], C)            # (C, 9*C)

    # ---- branch-dependent post-matmul per-channel affines (tiny) ----
    s2e = (sgn[:, None] * jnp.stack([p["bn2_scale"], p["bn2min_scale"]])).reshape(2, C, 1)
    b2e = (sgn[:, None] * jnp.stack([p["bn2_shift"], p["bn2min_shift"]])).reshape(2, C, 1)
    s3e = (sgn[:, None] * gate * jnp.stack([p["bn3_scale"], p["bn3min_scale"]])).reshape(2, C, 1)
    b3e = (gate * jnp.stack([p["bn3_shift"], p["bn3min_shift"]])).reshape(2, C, 1)

    nb = _pick_nb(N, C, HW, W)
    n_steps = N // nb

    kern = functools.partial(_block_kernel, H=H, W=W, C=C, NIMG=nb)
    vec_spec = pl.BlockSpec((1, C, 1), lambda b, n: (b, 0, 0))
    wgt_spec = pl.BlockSpec((C, 9 * C), lambda b, n: (0, 0))
    out = pl.pallas_call(
        kern,
        out_shape=jax.ShapeDtypeStruct((2, N, C, HW), jnp.float32),
        grid_spec=pltpu.PrefetchScalarGridSpec(
            num_scalar_prefetch=0,
            grid=(2, n_steps),                       # (branch, image block)
            in_specs=[
                pl.BlockSpec((1, nb, C, HW), lambda b, n: (b, n, 0, 0)),  # x
                vec_spec,                                                 # s1
                vec_spec,                                                 # b1
                vec_spec,                                                 # s2e
                vec_spec,                                                 # b2e
                vec_spec,                                                 # s3e
                vec_spec,                                                 # b3e
                wgt_spec,                                                 # w1
                wgt_spec,                                                 # w2
            ],
            out_specs=pl.BlockSpec((1, nb, C, HW), lambda b, n: (b, n, 0, 0)),
            scratch_shapes=[
                pltpu.VMEM((nb * C, HW + 2 * (W + 1)), jnp.bfloat16),  # line buf
                pltpu.VMEM((9 * C, nb * HW), jnp.bfloat16),            # patches
            ],
        ),
        compiler_params=pltpu.CompilerParams(
            dimension_semantics=("parallel", "parallel"),
            vmem_limit_bytes=48 * 1024 * 1024),
    )(x_all, s1, b1, s2e, b2e, s3e, b3e, w1m, w2m)

    ymax = out[0].reshape(N, C, H, W)
    ymin = out[1].reshape(N, C, H, W)
    return ymax, ymin


# ----------------------------- parameters -----------------------------

def _bn_affine(key, c, eps=1e-5):
    """Deterministic BatchNorm2d params folded into (scale, shift) (eval mode)."""
    k1, k2, k3, k4 = jax.random.split(key, 4)
    gamma = 1.0 + 0.1 * jax.random.normal(k1, (c,), jnp.float32)
    beta = 0.1 * jax.random.normal(k2, (c,), jnp.float32)
    running_mean = 0.1 * jax.random.normal(k3, (c,), jnp.float32)
    running_var = 1.0 + 0.1 * jax.random.uniform(k4, (c,), jnp.float32)
    scale = gamma / jnp.sqrt(running_var + eps)
    shift = beta - running_mean * scale
    return scale, shift


def init_basic_block_params(key, inplanes, planes):
    ks = jax.random.split(key, 8)
    p = {}
    p["bn1_scale"], p["bn1_shift"] = _bn_affine(ks[0], inplanes)
    p["bn1min_scale"], p["bn1min_shift"] = _bn_affine(ks[1], inplanes)
    p["bn2_scale"], p["bn2_shift"] = _bn_affine(ks[2], planes)
    p["bn2min_scale"], p["bn2min_shift"] = _bn_affine(ks[3], planes)
    p["bn3_scale"], p["bn3_shift"] = _bn_affine(ks[4], planes)
    p["bn3min_scale"], p["bn3min_shift"] = _bn_affine(ks[5], planes)
    # conv3x3 weights in PyTorch OIHW layout.
    p["w1_oihw"] = 0.1 * jax.random.normal(ks[6], (planes, inplanes, 3, 3), jnp.float32)
    p["w2_oihw"] = 0.1 * jax.random.normal(ks[7], (planes, planes, 3, 3), jnp.float32)
    return p


# ----------------------------- pure-JAX reference -----------------------------

def _ref_forward(xmax, xmin, p, droprate=0.0):
    def bn(x, s, b):
        return x * s[None, :, None, None] + b[None, :, None, None]

    def conv(x, w):
        return jax.lax.conv_general_dilated(
            x.astype(jnp.float32), w, (1, 1), "SAME",
            dimension_numbers=("NCHW", "OIHW", "NCHW"),
            precision=jax.lax.Precision.HIGHEST)

    gate = 0.5 * (1.0 - droprate)
    a = bn(xmax.astype(jnp.float32), p["bn1_scale"], p["bn1_shift"])
    a = conv(a, p["w1_oihw"])
    a = jnp.maximum(bn(a, p["bn2_scale"], p["bn2_shift"]), 0.0)
    a = conv(a, p["w2_oihw"])
    a = bn(a, p["bn3_scale"], p["bn3_shift"])

    b = bn(xmin.astype(jnp.float32), p["bn1min_scale"], p["bn1min_shift"])
    b = conv(b, p["w1_oihw"])
    b = jnp.minimum(bn(b, p["bn2min_scale"], p["bn2min_shift"]), 0.0)
    b = conv(b, p["w2_oihw"])
    b = bn(b, p["bn3min_scale"], p["bn3min_shift"])

    N, Cin, H, W = xmax.shape
    Cout = a.shape[1]
    sc_max, sc_min = xmax.astype(jnp.float32), xmin.astype(jnp.float32)
    if Cout != Cin:
        pad = [(0, 0), (0, Cout - Cin), (0, 0), (0, 0)]
        sc_max = jnp.pad(sc_max, pad)
        sc_min = jnp.pad(sc_min, pad)
    return gate * a + sc_max, gate * b + sc_min


# ----------------------------- main -----------------------------

if __name__ == "__main__":
    N, inplanes, planes, H, W = 2, 4, 8, 16, 16
    key = jax.random.PRNGKey(0)
    k_x0, k_x1, k_p = jax.random.split(key, 3)

    # Inputs in PyTorch NCHW layout: x = (x[0], x[1]).
    x_max = jax.random.normal(k_x0, (N, inplanes, H, W), jnp.float32)
    x_min = jax.random.normal(k_x1, (N, inplanes, H, W), jnp.float32)
    params = init_basic_block_params(k_p, inplanes, planes)

    ymax, ymin = basic_block_forward(x_max, x_min, params, droprate=0.0)
    ymax = jax.block_until_ready(ymax)
    ymin = jax.block_until_ready(ymin)

    # Sanity check against a pure-JAX f32 reference.  Tolerance is loosened
    # vs. the f32 kernel because activations/weights/patches are bf16 on the MXU.
    rmax, rmin = _ref_forward(x_max, x_min, params, droprate=0.0)
    np.testing.assert_allclose(np.asarray(ymax), np.asarray(rmax), atol=1e-1, rtol=2e-2)
    np.testing.assert_allclose(np.asarray(ymin), np.asarray(rmin), atol=1e-1, rtol=2e-2)
    assert ymax.shape == (N, planes, H, W) and ymin.shape == (N, planes, H, W)

    print("KERNEL_OK")
</pallas_src>

<mosaic_0001>
module attributes {stable_mosaic.version = 11 : i64} {
  func.func @_block_kernel(%arg0: i32, %arg1: i32, %arg2: memref<1x2x8x256xbf16, #tpu.memory_space<vmem>>, %arg3: memref<1x8x1xf32, #tpu.memory_space<vmem>>, %arg4: memref<1x8x1xf32, #tpu.memory_space<vmem>>, %arg5: memref<1x8x1xf32, #tpu.memory_space<vmem>>, %arg6: memref<1x8x1xf32, #tpu.memory_space<vmem>>, %arg7: memref<1x8x1xf32, #tpu.memory_space<vmem>>, %arg8: memref<1x8x1xf32, #tpu.memory_space<vmem>>, %arg9: memref<8x72xbf16, #tpu.memory_space<vmem>>, %arg10: memref<8x72xbf16, #tpu.memory_space<vmem>>, %arg11: memref<1x2x8x256xf32, #tpu.memory_space<vmem>>, %arg12: memref<16x290xbf16, #tpu.memory_space<vmem>>, %arg13: memref<72x512xbf16, #tpu.memory_space<vmem>>) attributes {dimension_semantics = [#tpu.dimension_semantics<parallel>, #tpu.dimension_semantics<parallel>], iteration_bounds = array<i64: 2, 1>, scalar_prefetch = 0 : i64, scratch_operands = 2 : i64, tpu.core_type = #tpu.core_type<tc>, window_params = [{transform_indices = @transform_0, window_bounds = array<i64: 1, 2, 8, 256>}, {transform_indices = @transform_1, window_bounds = array<i64: 1, 8, 1>}, {transform_indices = @transform_2, window_bounds = array<i64: 1, 8, 1>}, {transform_indices = @transform_3, window_bounds = array<i64: 1, 8, 1>}, {transform_indices = @transform_4, window_bounds = array<i64: 1, 8, 1>}, {transform_indices = @transform_5, window_bounds = array<i64: 1, 8, 1>}, {transform_indices = @transform_6, window_bounds = array<i64: 1, 8, 1>}, {pipeline_mode = #tpu.pipeline_mode<synchronous>, transform_indices = @transform_7, window_bounds = array<i64: 8, 72>}, {pipeline_mode = #tpu.pipeline_mode<synchronous>, transform_indices = @transform_8, window_bounds = array<i64: 8, 72>}, {transform_indices = @transform_9, window_bounds = array<i64: 1, 2, 8, 256>}]} {
    %0 = tpu.iota {dimensions = array<i32: 1>} : vector<1x256xi32>
    %c16_i32 = arith.constant 16 : i32
    %c0_i32 = arith.constant 0 : i32
    %1 = arith.cmpi eq, %c16_i32, %c0_i32 : i32
    %c1_i32 = arith.constant 1 : i32
    %2 = arith.select %1, %c1_i32, %c16_i32 : i32
    %3 = vector.broadcast %2 : i32 to vector<1x256xi32>
    %4 = arith.remsi %0, %3 : vector<1x256xi32>
    %c0_i32_0 = arith.constant 0 : i32
    %5 = vector.broadcast %c0_i32_0 : i32 to vector<1x256xi32>
    %6 = arith.cmpi ne, %4, %5 : vector<1x256xi32>
    %c0_i32_1 = arith.constant 0 : i32
    %7 = vector.broadcast %c0_i32_1 : i32 to vector<1x256xi32>
    %8 = arith.cmpi slt, %4, %7 : vector<1x256xi32>
    %c0_i32_2 = arith.constant 0 : i32
    %9 = arith.cmpi slt, %2, %c0_i32_2 : i32
    %10 = vector.broadcast %9 : i1 to vector<1x256xi1>
    %11 = vector.broadcast %10 : vector<1x256xi1> to vector<1x256xi1>
    %12 = arith.xori %8, %11 : vector<1x256xi1>
    %13 = arith.andi %12, %6 : vector<1x256xi1>
    %14 = vector.broadcast %2 : i32 to vector<1x256xi32>
    %15 = arith.addi %4, %14 : vector<1x256xi32>
    %16 = arith.select %13, %15, %4 : vector<1x256xi1>, vector<1x256xi32>
    %c0_i32_3 = arith.constant 0 : i32
    %17 = vector.broadcast %c0_i32_3 : i32 to vector<1x256xi32>
    %18 = arith.cmpi sgt, %16, %17 : vector<1x256xi32>
    %19 = arith.extui %18 : vector<1x256xi1> to vector<1x256xi32>
    %20 = arith.sitofp %19 : vector<1x256xi32> to vector<1x256xf32>
    %21 = arith.truncf %20 : vector<1x256xf32> to vector<1x256xbf16>
    %c15_i32 = arith.constant 15 : i32
    %22 = vector.broadcast %c15_i32 : i32 to vector<1x256xi32>
    %23 = arith.cmpi slt, %16, %22 : vector<1x256xi32>
    %24 = arith.extui %23 : vector<1x256xi1> to vector<1x256xi32>
    %25 = arith.sitofp %24 : vector<1x256xi32> to vector<1x256xf32>
    %26 = arith.truncf %25 : vector<1x256xf32> to vector<1x256xbf16>
    %cst = arith.constant 0.000000e+00 : bf16
    %27 = vector.broadcast %cst : bf16 to vector<8x17xbf16>
    %c0 = arith.constant 0 : index
    %c0_4 = arith.constant 0 : index
    %28 = vector.load %arg12[%c0, %c0_4] : memref<16x290xbf16, #tpu.memory_space<vmem>>, vector<8x17xbf16>
    tpu.vector_store %arg12[%c0, %c0_4], %27 {strides = array<i32>} : memref<16x290xbf16, #tpu.memory_space<vmem>>, vector<8x17xbf16>,
    %c0_5 = arith.constant 0 : index
    %c273 = arith.constant 273 : index
    %29 = vector.load %arg12[%c0_5, %c273] : memref<16x290xbf16, #tpu.memory_space<vmem>>, vector<8x17xbf16>
    tpu.vector_store %arg12[%c0_5, %c273], %27 {strides = array<i32>} : memref<16x290xbf16, #tpu.memory_space<vmem>>, vector<8x17xbf16>,
    %c8 = arith.constant 8 : index
    %c0_6 = arith.constant 0 : index
    %30 = vector.load %arg12[%c8, %c0_6] : memref<16x290xbf16, #tpu.memory_space<vmem>>, vector<8x17xbf16>
    tpu.vector_store %arg12[%c8, %c0_6], %27 {strides = array<i32>} : memref<16x290xbf16, #tpu.memory_space<vmem>>, vector<8x17xbf16>,
    %c8_7 = arith.constant 8 : index
    %c273_8 = arith.constant 273 : index
    %31 = vector.load %arg12[%c8_7, %c273_8] : memref<16x290xbf16, #tpu.memory_space<vmem>>, vector<8x17xbf16>
    tpu.vector_store %arg12[%c8_7, %c273_8], %27 {strides = array<i32>} : memref<16x290xbf16, #tpu.memory_space<vmem>>, vector<8x17xbf16>,
    %c0_9 = arith.constant 0 : index
    %c0_10 = arith.constant 0 : index
    %c0_11 = arith.constant 0 : index
    %32 = vector.load %arg3[%c0_9, %c0_10, %c0_11] : memref<1x8x1xf32, #tpu.memory_space<vmem>>, vector<1x8x1xf32>
    %33 = vector.shape_cast %32 : vector<1x8x1xf32> to vector<8x1xf32>
    %c0_12 = arith.constant 0 : index
    %c0_13 = arith.constant 0 : index
    %c0_14 = arith.constant 0 : index
    %34 = vector.load %arg4[%c0_12, %c0_13, %c0_14] : memref<1x8x1xf32, #tpu.memory_space<vmem>>, vector<1x8x1xf32>
    %35 = vector.shape_cast %34 : vector<1x8x1xf32> to vector<8x1xf32>
    %c0_15 = arith.constant 0 : index
    %c0_16 = arith.constant 0 : index
    %c0_17 = arith.constant 0 : index
    %c0_18 = arith.constant 0 : index
    %36 = vector.load %arg2[%c0_15, %c0_16, %c0_17, %c0_18] : memref<1x2x8x256xbf16, #tpu.memory_space<vmem>>, vector<1x1x8x256xbf16>
    %37 = vector.shape_cast %36 : vector<1x1x8x256xbf16> to vector<8x256xbf16>
    %38 = arith.extf %37 : vector<8x256xbf16> to vector<8x256xf32>
    %39 = vector.broadcast %33 : vector<8x1xf32> to vector<8x256xf32>
    %40 = arith.mulf %38, %39 : vector<8x256xf32>
    %41 = vector.broadcast %35 : vector<8x1xf32> to vector<8x256xf32>
    %42 = arith.addf %40, %41 : vector<8x256xf32>
    %43 = arith.truncf %42 : vector<8x256xf32> to vector<8x256xbf16>
    %c0_19 = arith.constant 0 : index
    %c17 = arith.constant 17 : index
    %44 = vector.load %arg12[%c0_19, %c17] : memref<16x290xbf16, #tpu.memory_space<vmem>>, vector<8x256xbf16>
    tpu.vector_store %arg12[%c0_19, %c17], %43 {strides = array<i32>} : memref<16x290xbf16, #tpu.memory_space<vmem>>, vector<8x256xbf16>,
    %c0_20 = arith.constant 0 : index
    %c1 = arith.constant 1 : index
    %c0_21 = arith.constant 0 : index
    %c0_22 = arith.constant 0 : index
    %45 = vector.load %arg2[%c0_20, %c1, %c0_21, %c0_22] : memref<1x2x8x256xbf16, #tpu.memory_space<vmem>>, vector<1x1x8x256xbf16>
    %46 = vector.shape_cast %45 : vector<1x1x8x256xbf16> to vector<8x256xbf16>
    %47 = arith.extf %46 : vector<8x256xbf16> to vector<8x256xf32>
    %48 = vector.broadcast %33 : vector<8x1xf32> to vector<8x256xf32>
    %49 = arith.mulf %47, %48 : vector<8x256xf32>
    %50 = vector.broadcast %35 : vector<8x1xf32> to vector<8x256xf32>
    %51 = arith.addf %49, %50 : vector<8x256xf32>
    %52 = arith.truncf %51 : vector<8x256xf32> to vector<8x256xbf16>
    %c8_23 = arith.constant 8 : index
    %c17_24 = arith.constant 17 : index
    %53 = vector.load %arg12[%c8_23, %c17_24] : memref<16x290xbf16, #tpu.memory_space<vmem>>, vector<8x256xbf16>
    tpu.vector_store %arg12[%c8_23, %c17_24], %52 {strides = array<i32>} : memref<16x290xbf16, #tpu.memory_space<vmem>>, vector<8x256xbf16>,
    %c0_25 = arith.constant 0 : index
    %c0_26 = arith.constant 0 : index
    %54 = vector.load %arg12[%c0_25, %c0_26] : memref<16x290xbf16, #tpu.memory_space<vmem>>, vector<8x256xbf16>
    %55 = vector.broadcast %21 : vector<1x256xbf16> to vector<8x256xbf16>
    %56 = arith.mulf %54, %55 : vector<8x256xbf16>
    %c0_27 = arith.constant 0 : index
    %c0_28 = arith.constant 0 : index
    %57 = vector.load %arg13[%c0_27, %c0_28] : memref<72x512xbf16, #tpu.memory_space<vmem>>, vector<8x256xbf16>
    tpu.vector_store %arg13[%c0_27, %c0_28], %56 {strides = array<i32>} : memref<72x512xbf16, #tpu.memory_space<vmem>>, vector<8x256xbf16>,
    %c8_29 = arith.constant 8 : index
    %c0_30 = arith.constant 0 : index
    %58 = vector.load %arg12[%c8_29, %c0_30] : memref<16x290xbf16, #tpu.memory_space<vmem>>, vector<8x256xbf16>
    %59 = vector.broadcast %21 : vector<1x256xbf16> to vector<8x256xbf16>
    %60 = arith.mulf %58, %59 : vector<8x256xbf16>
    %c0_31 = arith.constant 0 : index
    %c256 = arith.constant 256 : index
    %61 = vector.load %arg13[%c0_31, %c256] : memref<72x512xbf16, #tpu.memory_space<vmem>>, vector<8x256xbf16>
    tpu.vector_store %arg13[%c0_31, %c256], %60 {strides = array<i32>} : memref<72x512xbf16, #tpu.memory_space<vmem>>, vector<8x256xbf16>,
    %c0_32 = arith.constant 0 : index
    %c1_33 = arith.constant 1 : index
    %62 = vector.load %arg12[%c0_32, %c1_33] : memref<16x290xbf16, #tpu.memory_space<vmem>>, vector<8x256xbf16>
    %c8_34 = arith.constant 8 : index
    %c0_35 = arith.constant 0 : index
    %63 = vector.load %arg13[%c8_34, %c0_35] : memref<72x512xbf16, #tpu.memory_space<vmem>>, vector<8x256xbf16>
    tpu.vector_store %arg13[%c8_34, %c0_35], %62 {strides = array<i32>} : memref<72x512xbf16, #tpu.memory_space<vmem>>, vector<8x256xbf16>,
    %c8_36 = arith.constant 8 : index
    %c1_37 = arith.constant 1 : index
    %64 = vector.load %arg12[%c8_36, %c1_37] : memref<16x290xbf16, #tpu.memory_space<vmem>>, vector<8x256xbf16>
    %c8_38 = arith.constant 8 : index
    %c256_39 = arith.constant 256 : index
    %65 = vector.load %arg13[%c8_38, %c256_39] : memref<72x512xbf16, #tpu.memory_space<vmem>>, vector<8x256xbf16>
    tpu.vector_store %arg13[%c8_38, %c256_39], %64 {strides = array<i32>} : memref<72x512xbf16, #tpu.memory_space<vmem>>, vector<8x256xbf16>,
    %c0_40 = arith.constant 0 : index
    %c2 = arith.constant 2 : index
    %66 = vector.load %arg12[%c0_40, %c2] : memref<16x290xbf16, #tpu.memory_space<vmem>>, vector<8x256xbf16>
    %67 = vector.broadcast %26 : vector<1x256xbf16> to vector<8x256xbf16>
    %68 = arith.mulf %66, %67 : vector<8x256xbf16>
    %c16 = arith.constant 16 : index
    %c0_41 = arith.constant 0 : index
    %69 = vector.load %arg13[%c16, %c0_41] : memref<72x512xbf16, #tpu.memory_space<vmem>>, vector<8x256xbf16>
    tpu.vector_store %arg13[%c16, %c0_41], %68 {strides = array<i32>} : memref<72x512xbf16, #tpu.memory_space<vmem>>, vector<8x256xbf16>,
    %c8_42 = arith.constant 8 : index
    %c2_43 = arith.constant 2 : index
    %70 = vector.load %arg12[%c8_42, %c2_43] : memref<16x290xbf16, #tpu.memory_space<vmem>>, vector<8x256xbf16>
    %71 = vector.broadcast %26 : vector<1x256xbf16> to vector<8x256xbf16>
    %72 = arith.mulf %70, %71 : vector<8x256xbf16>
    %c16_44 = arith.constant 16 : index
    %c256_45 = arith.constant 256 : index
    %73 = vector.load %arg13[%c16_44, %c256_45] : memref<72x512xbf16, #tpu.memory_space<vmem>>, vector<8x256xbf16>
    tpu.vector_store %arg13[%c16_44, %c256_45], %72 {strides = array<i32>} : memref<72x512xbf16, #tpu.memory_space<vmem>>, vector<8x256xbf16>,
    %c0_46 = arith.constant 0 : index
    %c16_47 = arith.constant 16 : index
    %74 = vector.load %arg12[%c0_46, %c16_47] : memref<16x290xbf16, #tpu.memory_space<vmem>>, vector<8x256xbf16>
    %75 = vector.broadcast %21 : vector<1x256xbf16> to vector<8x256xbf16>
    %76 = arith.mulf %74, %75 : vector<8x256xbf16>
    %c24 = arith.constant 24 : index
    %c0_48 = arith.constant 0 : index
    %77 = vector.load %arg13[%c24, %c0_48] : memref<72x512xbf16, #tpu.memory_space<vmem>>, vector<8x256xbf16>
    tpu.vector_store %arg13[%c24, %c0_48], %76 {strides = array<i32>} : memref<72x512xbf16, #tpu.memory_space<vmem>>, vector<8x256xbf16>,
    %c8_49 = arith.constant 8 : index
    %c16_50 = arith.constant 16 : index
    %78 = vector.load %arg12[%c8_49, %c16_50] : memref<16x290xbf16, #tpu.memory_space<vmem>>, vector<8x256xbf16>
    %79 = vector.broadcast %21 : vector<1x256xbf16> to vector<8x256xbf16>
    %80 = arith.mulf %78, %79 : vector<8x256xbf16>
    %c24_51 = arith.constant 24 : index
    %c256_52 = arith.constant 256 : index
    %81 = vector.load %arg13[%c24_51, %c256_52] : memref<72x512xbf16, #tpu.memory_space<vmem>>, vector<8x256xbf16>
    tpu.vector_store %arg13[%c24_51, %c256_52], %80 {strides = array<i32>} : memref<72x512xbf16, #tpu.memory_space<vmem>>, vector<8x256xbf16>,
    %c0_53 = arith.constant 0 : index
    %c17_54 = arith.constant 17 : index
    %82 = vector.load %arg12[%c0_53, %c17_54] : memref<16x290xbf16, #tpu.memory_space<vmem>>, vector<8x256xbf16>
    %c32 = arith.constant 32 : index
    %c0_55 = arith.constant 0 : index
    %83 = vector.load %arg13[%c32, %c0_55] : memref<72x512xbf16, #tpu.memory_space<vmem>>, vector<8x256xbf16>
    tpu.vector_store %arg13[%c32, %c0_55], %82 {strides = array<i32>} : memref<72x512xbf16, #tpu.memory_space<vmem>>, vector<8x256xbf16>,
    %c8_56 = arith.constant 8 : index
    %c17_57 = arith.constant 17 : index
    %84 = vector.load %arg12[%c8_56, %c17_57] : memref<16x290xbf16, #tpu.memory_space<vmem>>, vector<8x256xbf16>
    %c32_58 = arith.constant 32 : index
    %c256_59 = arith.constant 256 : index
    %85 = vector.load %arg13[%c32_58, %c256_59] : memref<72x512xbf16, #tpu.memory_space<vmem>>, vector<8x256xbf16>
    tpu.vector_store %arg13[%c32_58, %c256_59], %84 {strides = array<i32>} : memref<72x512xbf16, #tpu.memory_space<vmem>>, vector<8x256xbf16>,
    %c0_60 = arith.constant 0 : index
    %c18 = arith.constant 18 : index
    %86 = vector.load %arg12[%c0_60, %c18] : memref<16x290xbf16, #tpu.memory_space<vmem>>, vector<8x256xbf16>
    %87 = vector.broadcast %26 : vector<1x256xbf16> to vector<8x256xbf16>
    %88 = arith.mulf %86, %87 : vector<8x256xbf16>
    %c40 = arith.constant 40 : index
    %c0_61 = arith.constant 0 : index
    %89 = vector.load %arg13[%c40, %c0_61] : memref<72x512xbf16, #tpu.memory_space<vmem>>, vector<8x256xbf16>
    tpu.vector_store %arg13[%c40, %c0_61], %88 {strides = array<i32>} : memref<72x512xbf16, #tpu.memory_space<vmem>>, vector<8x256xbf16>,
    %c8_62 = arith.constant 8 : index
    %c18_63 = arith.constant 18 : index
    %90 = vector.load %arg12[%c8_62, %c18_63] : memref<16x290xbf16, #tpu.memory_space<vmem>>, vector<8x256xbf16>
    %91 = vector.broadcast %26 : vector<1x256xbf16> to vector<8x256xbf16>
    %92 = arith.mulf %90, %91 : vector<8x256xbf16>
    %c40_64 = arith.constant 40 : index
    %c256_65 = arith.constant 256 : index
    %93 = vector.load %arg13[%c40_64, %c256_65] : memref<72x512xbf16, #tpu.memory_space<vmem>>, vector<8x256xbf16>
    tpu.vector_store %arg13[%c40_64, %c256_65], %92 {strides = array<i32>} : memref<72x512xbf16, #tpu.memory_space<vmem>>, vector<8x256xbf16>,
    %c0_66 = arith.constant 0 : index
    %c32_67 = arith.constant 32 : index
    %94 = vector.load %arg12[%c0_66, %c32_67] : memref<16x290xbf16, #tpu.memory_space<vmem>>, vector<8x256xbf16>
    %95 = vector.broadcast %21 : vector<1x256xbf16> to vector<8x256xbf16>
    %96 = arith.mulf %94, %95 : vector<8x256xbf16>
    %c48 = arith.constant 48 : index
    %c0_68 = arith.constant 0 : index
    %97 = vector.load %arg13[%c48, %c0_68] : memref<72x512xbf16, #tpu.memory_space<vmem>>, vector<8x256xbf16>
    tpu.vector_store %arg13[%c48, %c0_68], %96 {strides = array<i32>} : memref<72x512xbf16, #tpu.memory_space<vmem>>, vector<8x256xbf16>,
    %c8_69 = arith.constant 8 : index
    %c32_70 = arith.constant 32 : index
    %98 = vector.load %arg12[%c8_69, %c32_70] : memref<16x290xbf16, #tpu.memory_space<vmem>>, vector<8x256xbf16>
    %99 = vector.broadcast %21 : vector<1x256xbf16> to vector<8x256xbf16>
    %100 = arith.mulf %98, %99 : vector<8x256xbf16>
    %c48_71 = arith.constant 48 : index
    %c256_72 = arith.constant 256 : index
    %101 = vector.load %arg13[%c48_71, %c256_72] : memref<72x512xbf16, #tpu.memory_space<vmem>>, vector<8x256xbf16>
    tpu.vector_store %arg13[%c48_71, %c256_72], %100 {strides = array<i32>} : memref<72x512xbf16, #tpu.memory_space<vmem>>, vector<8x256xbf16>,
    %c0_73 = arith.constant 0 : index
    %c33 = arith.constant 33 : index
    %102 = vector.load %arg12[%c0_73, %c33] : memref<16x290xbf16, #tpu.memory_space<vmem>>, vector<8x256xbf16>
    %c56 = arith.constant 56 : index
    %c0_74 = arith.constant 0 : index
    %103 = vector.load %arg13[%c56, %c0_74] : memref<72x512xbf16, #tpu.memory_space<vmem>>, vector<8x256xbf16>
    tpu.vector_store %arg13[%c56, %c0_74], %102 {strides = array<i32>} : memref<72x512xbf16, #tpu.memory_space<vmem>>, vector<8x256xbf16>,
    %c8_75 = arith.constant 8 : index
    %c33_76 = arith.constant 33 : index
    %104 = vector.load %arg12[%c8_75, %c33_76] : memref<16x290xbf16, #tpu.memory_space<vmem>>, vector<8x256xbf16>
    %c56_77 = arith.constant 56 : index
    %c256_78 = arith.constant 256 : index
    %105 = vector.load %arg13[%c56_77, %c256_78] : memref<72x512xbf16, #tpu.memory_space<vmem>>, vector<8x256xbf16>
    tpu.vector_store %arg13[%c56_77, %c256_78], %104 {strides = array<i32>} : memref<72x512xbf16, #tpu.memory_space<vmem>>, vector<8x256xbf16>,
    %c0_79 = arith.constant 0 : index
    %c34 = arith.constant 34 : index
    %106 = vector.load %arg12[%c0_79, %c34] : memref<16x290xbf16, #tpu.memory_space<vmem>>, vector<8x256xbf16>
    %107 = vector.broadcast %26 : vector<1x256xbf16> to vector<8x256xbf16>
    %108 = arith.mulf %106, %107 : vector<8x256xbf16>
    %c64 = arith.constant 64 : index
    %c0_80 = arith.constant 0 : index
    %109 = vector.load %arg13[%c64, %c0_80] : memref<72x512xbf16, #tpu.memory_space<vmem>>, vector<8x256xbf16>
    tpu.vector_store %arg13[%c64, %c0_80], %108 {strides = array<i32>} : memref<72x512xbf16, #tpu.memory_space<vmem>>, vector<8x256xbf16>,
    %c8_81 = arith.constant 8 : index
    %c34_82 = arith.constant 34 : index
    %110 = vector.load %arg12[%c8_81, %c34_82] : memref<16x290xbf16, #tpu.memory_space<vmem>>, vector<8x256xbf16>
    %111 = vector.broadcast %26 : vector<1x256xbf16> to vector<8x256xbf16>
    %112 = arith.mulf %110, %111 : vector<8x256xbf16>
    %c64_83 = arith.constant 64 : index
    %c256_84 = arith.constant 256 : index
    %113 = vector.load %arg13[%c64_83, %c256_84] : memref<72x512xbf16, #tpu.memory_space<vmem>>, vector<8x256xbf16>
    tpu.vector_store %arg13[%c64_83, %c256_84], %112 {strides = array<i32>} : memref<72x512xbf16, #tpu.memory_space<vmem>>, vector<8x256xbf16>,
    %c0_85 = arith.constant 0 : index
    %c0_86 = arith.constant 0 : index
    %114 = vector.load %arg9[%c0_85, %c0_86] : memref<8x72xbf16, #tpu.memory_space<vmem>>, vector<8x72xbf16>
    %c0_87 = arith.constant 0 : index
    %c0_88 = arith.constant 0 : index
    %115 = vector.load %arg13[%c0_87, %c0_88] : memref<72x512xbf16, #tpu.memory_space<vmem>>, vector<72x512xbf16>
    %cst_89 = arith.constant dense<0.000000e+00> : vector<8x512xf32>
    %116 = tpu.matmul %114, %115, %cst_89 {dimension_numbers = #tpu.dot_dimension_numbers<[1], [0], [0], [1], [0, 0, 1, 1], [], []>} : vector<8x72xbf16>, vector<72x512xbf16>, vector<8x512xf32> -> vector<8x512xf32>
    %c0_90 = arith.constant 0 : index
    %c0_91 = arith.constant 0 : index
    %c0_92 = arith.constant 0 : index
    %117 = vector.load %arg5[%c0_90, %c0_91, %c0_92] : memref<1x8x1xf32, #tpu.memory_space<vmem>>, vector<1x8x1xf32>
    %118 = vector.shape_cast %117 : vector<1x8x1xf32> to vector<8x1xf32>
    %119 = vector.broadcast %118 : vector<8x1xf32> to vector<8x512xf32>
    %120 = arith.mulf %116, %119 : vector<8x512xf32>
    %c0_93 = arith.constant 0 : index
    %c0_94 = arith.constant 0 : index
    %c0_95 = arith.constant 0 : index
    %121 = vector.load %arg6[%c0_93, %c0_94, %c0_95] : memref<1x8x1xf32, #tpu.memory_space<vmem>>, vector<1x8x1xf32>
    %122 = vector.shape_cast %121 : vector<1x8x1xf32> to vector<8x1xf32>
    %123 = vector.broadcast %122 : vector<8x1xf32> to vector<8x512xf32>
    %124 = arith.addf %120, %123 : vector<8x512xf32>
    %cst_96 = arith.constant 0.000000e+00 : f32
    %125 = vector.broadcast %cst_96 : f32 to vector<8x512xf32>
    %126 = arith.maximumf %124, %125 : vector<8x512xf32>
    %127 = arith.truncf %126 : vector<8x512xf32> to vector<8x512xbf16>
    %128 = vector.extract_strided_slice %127 {offsets = [0, 0], sizes = [8, 256], strides = [1, 1]} : vector<8x512xbf16> to vector<8x256xbf16>
    %c0_97 = arith.constant 0 : index
    %c17_98 = arith.constant 17 : index
    %129 = vector.load %arg12[%c0_97, %c17_98] : memref<16x290xbf16, #tpu.memory_space<vmem>>, vector<8x256xbf16>
    tpu.vector_store %arg12[%c0_97, %c17_98], %128 {strides = array<i32>} : memref<16x290xbf16, #tpu.memory_space<vmem>>, vector<8x256xbf16>,
    %130 = vector.extract_strided_slice %127 {offsets = [0, 256], sizes = [8, 256], strides = [1, 1]} : vector<8x512xbf16> to vector<8x256xbf16>
    %c8_99 = arith.constant 8 : index
    %c17_100 = arith.constant 17 : index
    %131 = vector.load %arg12[%c8_99, %c17_100] : memref<16x290xbf16, #tpu.memory_space<vmem>>, vector<8x256xbf16>
    tpu.vector_store %arg12[%c8_99, %c17_100], %130 {strides = array<i32>} : memref<16x290xbf16, #tpu.memory_space<vmem>>, vector<8x256xbf16>,
    %c0_101 = arith.constant 0 : index
    %c0_102 = arith.constant 0 : index
    %132 = vector.load %arg12[%c0_101, %c0_102] : memref<16x290xbf16, #tpu.memory_space<vmem>>, vector<8x256xbf16>
    %133 = vector.broadcast %21 : vector<1x256xbf16> to vector<8x256xbf16>
    %134 = arith.mulf %132, %133 : vector<8x256xbf16>
    %c0_103 = arith.constant 0 : index
    %c0_104 = arith.constant 0 : index
    %135 = vector.load %arg13[%c0_103, %c0_104] : memref<72x512xbf16, #tpu.memory_space<vmem>>, vector<8x256xbf16>
    tpu.vector_store %arg13[%c0_103, %c0_104], %134 {strides = array<i32>} : memref<72x512xbf16, #tpu.memory_space<vmem>>, vector<8x256xbf16>,
    %c8_105 = arith.constant 8 : index
    %c0_106 = arith.constant 0 : index
    %136 = vector.load %arg12[%c8_105, %c0_106] : memref<16x290xbf16, #tpu.memory_space<vmem>>, vector<8x256xbf16>
    %137 = vector.broadcast %21 : vector<1x256xbf16> to vector<8x256xbf16>
    %138 = arith.mulf %136, %137 : vector<8x256xbf16>
    %c0_107 = arith.constant 0 : index
    %c256_108 = arith.constant 256 : index
    %139 = vector.load %arg13[%c0_107, %c256_108] : memref<72x512xbf16, #tpu.memory_space<vmem>>, vector<8x256xbf16>
    tpu.vector_store %arg13[%c0_107, %c256_108], %138 {strides = array<i32>} : memref<72x512xbf16, #tpu.memory_space<vmem>>, vector<8x256xbf16>,
    %c0_109 = arith.constant 0 : index
    %c1_110 = arith.constant 1 : index
    %140 = vector.load %arg12[%c0_109, %c1_110] : memref<16x290xbf16, #tpu.memory_space<vmem>>, vector<8x256xbf16>
    %c8_111 = arith.constant 8 : index
    %c0_112 = arith.constant 0 : index
    %141 = vector.load %arg13[%c8_111, %c0_112] : memref<72x512xbf16, #tpu.memory_space<vmem>>, vector<8x256xbf16>
    tpu.vector_store %arg13[%c8_111, %c0_112], %140 {strides = array<i32>} : memref<72x512xbf16, #tpu.memory_space<vmem>>, vector<8x256xbf16>,
    %c8_113 = arith.constant 8 : index
    %c1_114 = arith.constant 1 : index
    %142 = vector.load %arg12[%c8_113, %c1_114] : memref<16x290xbf16, #tpu.memory_space<vmem>>, vector<8x256xbf16>
    %c8_115 = arith.constant 8 : index
    %c256_116 = arith.constant 256 : index
    %143 = vector.load %arg13[%c8_115, %c256_116] : memref<72x512xbf16, #tpu.memory_space<vmem>>, vector<8x256xbf16>
    tpu.vector_store %arg13[%c8_115, %c256_116], %142 {strides = array<i32>} : memref<72x512xbf16, #tpu.memory_space<vmem>>, vector<8x256xbf16>,
    %c0_117 = arith.constant 0 : index
    %c2_118 = arith.constant 2 : index
    %144 = vector.load %arg12[%c0_117, %c2_118] : memref<16x290xbf16, #tpu.memory_space<vmem>>, vector<8x256xbf16>
    %145 = vector.broadcast %26 : vector<1x256xbf16> to vector<8x256xbf16>
    %146 = arith.mulf %144, %145 : vector<8x256xbf16>
    %c16_119 = arith.constant 16 : index
    %c0_120 = arith.constant 0 : index
    %147 = vector.load %arg13[%c16_119, %c0_120] : memref<72x512xbf16, #tpu.memory_space<vmem>>, vector<8x256xbf16>
    tpu.vector_store %arg13[%c16_119, %c0_120], %146 {strides = array<i32>} : memref<72x512xbf16, #tpu.memory_space<vmem>>, vector<8x256xbf16>,
    %c8_121 = arith.constant 8 : index
    %c2_122 = arith.constant 2 : index
    %148 = vector.load %arg12[%c8_121, %c2_122] : memref<16x290xbf16, #tpu.memory_space<vmem>>, vector<8x256xbf16>
    %149 = vector.broadcast %26 : vector<1x256xbf16> to vector<8x256xbf16>
    %150 = arith.mulf %148, %149 : vector<8x256xbf16>
    %c16_123 = arith.constant 16 : index
    %c256_124 = arith.constant 256 : index
    %151 = vector.load %arg13[%c16_123, %c256_124] : memref<72x512xbf16, #tpu.memory_space<vmem>>, vector<8x256xbf16>
    tpu.vector_store %arg13[%c16_123, %c256_124], %150 {strides = array<i32>} : memref<72x512xbf16, #tpu.memory_space<vmem>>, vector<8x256xbf16>,
    %c0_125 = arith.constant 0 : index
    %c16_126 = arith.constant 16 : index
    %152 = vector.load %arg12[%c0_125, %c16_126] : memref<16x290xbf16, #tpu.memory_space<vmem>>, vector<8x256xbf16>
    %153 = vector.broadcast %21 : vector<1x256xbf16> to vector<8x256xbf16>
    %154 = arith.mulf %152, %153 : vector<8x256xbf16>
    %c24_127 = arith.constant 24 : index
    %c0_128 = arith.constant 0 : index
    %155 = vector.load %arg13[%c24_127, %c0_128] : memref<72x512xbf16, #tpu.memory_space<vmem>>, vector<8x256xbf16>
    tpu.vector_store %arg13[%c24_127, %c0_128], %154 {strides = array<i32>} : memref<72x512xbf16, #tpu.memory_space<vmem>>, vector<8x256xbf16>,
    %c8_129 = arith.constant 8 : index
    %c16_130 = arith.constant 16 : index
    %156 = vector.load %arg12[%c8_129, %c16_130] : memref<16x290xbf16, #tpu.memory_space<vmem>>, vector<8x256xbf16>
    %157 = vector.broadcast %21 : vector<1x256xbf16> to vector<8x256xbf16>
    %158 = arith.mulf %156, %157 : vector<8x256xbf16>
    %c24_131 = arith.constant 24 : index
    %c256_132 = arith.constant 256 : index
    %159 = vector.load %arg13[%c24_131, %c256_132] : memref<72x512xbf16, #tpu.memory_space<vmem>>, vector<8x256xbf16>
    tpu.vector_store %arg13[%c24_131, %c256_132], %158 {strides = array<i32>} : memref<72x512xbf16, #tpu.memory_space<vmem>>, vector<8x256xbf16>,
    %c0_133 = arith.constant 0 : index
    %c17_134 = arith.constant 17 : index
    %160 = vector.load %arg12[%c0_133, %c17_134] : memref<16x290xbf16, #tpu.memory_space<vmem>>, vector<8x256xbf16>
    %c32_135 = arith.constant 32 : index
    %c0_136 = arith.constant 0 : index
    %161 = vector.load %arg13[%c32_135, %c0_136] : memref<72x512xbf16, #tpu.memory_space<vmem>>, vector<8x256xbf16>
    tpu.vector_store %arg13[%c32_135, %c0_136], %160 {strides = array<i32>} : memref<72x512xbf16, #tpu.memory_space<vmem>>, vector<8x256xbf16>,
    %c8_137 = arith.constant 8 : index
    %c17_138 = arith.constant 17 : index
    %162 = vector.load %arg12[%c8_137, %c17_138] : memref<16x290xbf16, #tpu.memory_space<vmem>>, vector<8x256xbf16>
    %c32_139 = arith.constant 32 : index
    %c256_140 = arith.constant 256 : index
    %163 = vector.load %arg13[%c32_139, %c256_140] : memref<72x512xbf16, #tpu.memory_space<vmem>>, vector<8x256xbf16>
    tpu.vector_store %arg13[%c32_139, %c256_140], %162 {strides = array<i32>} : memref<72x512xbf16, #tpu.memory_space<vmem>>, vector<8x256xbf16>,
    %c0_141 = arith.constant 0 : index
    %c18_142 = arith.constant 18 : index
    %164 = vector.load %arg12[%c0_141, %c18_142] : memref<16x290xbf16, #tpu.memory_space<vmem>>, vector<8x256xbf16>
    %165 = vector.broadcast %26 : vector<1x256xbf16> to vector<8x256xbf16>
    %166 = arith.mulf %164, %165 : vector<8x256xbf16>
    %c40_143 = arith.constant 40 : index
    %c0_144 = arith.constant 0 : index
    %167 = vector.load %arg13[%c40_143, %c0_144] : memref<72x512xbf16, #tpu.memory_space<vmem>>, vector<8x256xbf16>
    tpu.vector_store %arg13[%c40_143, %c0_144], %166 {strides = array<i32>} : memref<72x512xbf16, #tpu.memory_space<vmem>>, vector<8x256xbf16>,
    %c8_145 = arith.constant 8 : index
    %c18_146 = arith.constant 18 : index
    %168 = vector.load %arg12[%c8_145, %c18_146] : memref<16x290xbf16, #tpu.memory_space<vmem>>, vector<8x256xbf16>
    %169 = vector.broadcast %26 : vector<1x256xbf16> to vector<8x256xbf16>
    %170 = arith.mulf %168, %169 : vector<8x256xbf16>
    %c40_147 = arith.constant 40 : index
    %c256_148 = arith.constant 256 : index
    %171 = vector.load %arg13[%c40_147, %c256_148] : memref<72x512xbf16, #tpu.memory_space<vmem>>, vector<8x256xbf16>
    tpu.vector_store %arg13[%c40_147, %c256_148], %170 {strides = array<i32>} : memref<72x512xbf16, #tpu.memory_space<vmem>>, vector<8x256xbf16>,
    %c0_149 = arith.constant 0 : index
    %c32_150 = arith.constant 32 : index
    %172 = vector.load %arg12[%c0_149, %c32_150] : memref<16x290xbf16, #tpu.memory_space<vmem>>, vector<8x256xbf16>
    %173 = vector.broadcast %21 : vector<1x256xbf16> to vector<8x256xbf16>
    %174 = arith.mulf %172, %173 : vector<8x256xbf16>
    %c48_151 = arith.constant 48 : index
    %c0_152 = arith.constant 0 : index
    %175 = vector.load %arg13[%c48_151, %c0_152] : memref<72x512xbf16, #tpu.memory_space<vmem>>, vector<8x256xbf16>
    tpu.vector_store %arg13[%c48_151, %c0_152], %174 {strides = array<i32>} : memref<72x512xbf16, #tpu.memory_space<vmem>>, vector<8x256xbf16>,
    %c8_153 = arith.constant 8 : index
    %c32_154 = arith.constant 32 : index
    %176 = vector.load %arg12[%c8_153, %c32_154] : memref<16x290xbf16, #tpu.memory_space<vmem>>, vector<8x256xbf16>
    %177 = vector.broadcast %21 : vector<1x256xbf16> to vector<8x256xbf16>
    %178 = arith.mulf %176, %177 : vector<8x256xbf16>
    %c48_155 = arith.constant 48 : index
    %c256_156 = arith.constant 256 : index
    %179 = vector.load %arg13[%c48_155, %c256_156] : memref<72x512xbf16, #tpu.memory_space<vmem>>, vector<8x256xbf16>
    tpu.vector_store %arg13[%c48_155, %c256_156], %178 {strides = array<i32>} : memref<72x512xbf16, #tpu.memory_space<vmem>>, vector<8x256xbf16>,
    %c0_157 = arith.constant 0 : index
    %c33_158 = arith.constant 33 : index
    %180 = vector.load %arg12[%c0_157, %c33_158] : memref<16x290xbf16, #tpu.memory_space<vmem>>, vector<8x256xbf16>
    %c56_159 = arith.constant 56 : index
    %c0_160 = arith.constant 0 : index
    %181 = vector.load %arg13[%c56_159, %c0_160] : memref<72x512xbf16, #tpu.memory_space<vmem>>, vector<8x256xbf16>
    tpu.vector_store %arg13[%c56_159, %c0_160], %180 {strides = array<i32>} : memref<72x512xbf16, #tpu.memory_space<vmem>>, vector<8x256xbf16>,
    %c8_161 = arith.constant 8 : index
    %c33_162 = arith.constant 33 : index
    %182 = vector.load %arg12[%c8_161, %c33_162] : memref<16x290xbf16, #tpu.memory_space<vmem>>, vector<8x256xbf16>
    %c56_163 = arith.constant 56 : index
    %c256_164 = arith.constant 256 : index
    %183 = vector.load %arg13[%c56_163, %c256_164] : memref<72x512xbf16, #tpu.memory_space<vmem>>, vector<8x256xbf16>
    tpu.vector_store %arg13[%c56_163, %c256_164], %182 {strides = array<i32>} : memref<72x512xbf16, #tpu.memory_space<vmem>>, vector<8x256xbf16>,
    %c0_165 = arith.constant 0 : index
    %c34_166 = arith.constant 34 : index
    %184 = vector.load %arg12[%c0_165, %c34_166] : memref<16x290xbf16, #tpu.memory_space<vmem>>, vector<8x256xbf16>
    %185 = vector.broadcast %26 : vector<1x256xbf16> to vector<8x256xbf16>
    %186 = arith.mulf %184, %185 : vector<8x256xbf16>
    %c64_167 = arith.constant 64 : index
    %c0_168 = arith.constant 0 : index
    %187 = vector.load %arg13[%c64_167, %c0_168] : memref<72x512xbf16, #tpu.memory_space<vmem>>, vector<8x256xbf16>
    tpu.vector_store %arg13[%c64_167, %c0_168], %186 {strides = array<i32>} : memref<72x512xbf16, #tpu.memory_space<vmem>>, vector<8x256xbf16>,
    %c8_169 = arith.constant 8 : index
    %c34_170 = arith.constant 34 : index
    %188 = vector.load %arg12[%c8_169, %c34_170] : memref<16x290xbf16, #tpu.memory_space<vmem>>, vector<8x256xbf16>
    %189 = vector.broadcast %26 : vector<1x256xbf16> to vector<8x256xbf16>
    %190 = arith.mulf %188, %189 : vector<8x256xbf16>
    %c64_171 = arith.constant 64 : index
    %c256_172 = arith.constant 256 : index
    %191 = vector.load %arg13[%c64_171, %c256_172] : memref<72x512xbf16, #tpu.memory_space<vmem>>, vector<8x256xbf16>
    tpu.vector_store %arg13[%c64_171, %c256_172], %190 {strides = array<i32>} : memref<72x512xbf16, #tpu.memory_space<vmem>>, vector<8x256xbf16>,
    %c0_173 = arith.constant 0 : index
    %c0_174 = arith.constant 0 : index
    %192 = vector.load %arg10[%c0_173, %c0_174] : memref<8x72xbf16, #tpu.memory_space<vmem>>, vector<8x72xbf16>
    %c0_175 = arith.constant 0 : index
    %c0_176 = arith.constant 0 : index
    %193 = vector.load %arg13[%c0_175, %c0_176] : memref<72x512xbf16, #tpu.memory_space<vmem>>, vector<72x512xbf16>
    %cst_177 = arith.constant dense<0.000000e+00> : vector<8x512xf32>
    %194 = tpu.matmul %192, %193, %cst_177 {dimension_numbers = #tpu.dot_dimension_numbers<[1], [0], [0], [1], [0, 0, 1, 1], [], []>} : vector<8x72xbf16>, vector<72x512xbf16>, vector<8x512xf32> -> vector<8x512xf32>
    %c0_178 = arith.constant 0 : index
    %c0_179 = arith.constant 0 : index
    %c0_180 = arith.constant 0 : index
    %195 = vector.load %arg7[%c0_178, %c0_179, %c0_180] : memref<1x8x1xf32, #tpu.memory_space<vmem>>, vector<1x8x1xf32>
    %196 = vector.shape_cast %195 : vector<1x8x1xf32> to vector<8x1xf32>
    %197 = vector.broadcast %196 : vector<8x1xf32> to vector<8x512xf32>
    %198 = arith.mulf %194, %197 : vector<8x512xf32>
    %c0_181 = arith.constant 0 : index
    %c0_182 = arith.constant 0 : index
    %c0_183 = arith.constant 0 : index
    %199 = vector.load %arg8[%c0_181, %c0_182, %c0_183] : memref<1x8x1xf32, #tpu.memory_space<vmem>>, vector<1x8x1xf32>
    %200 = vector.shape_cast %199 : vector<1x8x1xf32> to vector<8x1xf32>
    %201 = vector.broadcast %200 : vector<8x1xf32> to vector<8x512xf32>
    %202 = arith.addf %198, %201 : vector<8x512xf32>
    %203 = vector.extract_strided_slice %202 {offsets = [0, 0], sizes = [8, 256], strides = [1, 1]} : vector<8x512xf32> to vector<8x256xf32>
    %c0_184 = arith.constant 0 : index
    %c0_185 = arith.constant 0 : index
    %c0_186 = arith.constant 0 : index
    %c0_187 = arith.constant 0 : index
    %204 = vector.load %arg2[%c0_184, %c0_185, %c0_186, %c0_187] : memref<1x2x8x256xbf16, #tpu.memory_space<vmem>>, vector<1x1x8x256xbf16>
    %205 = vector.shape_cast %204 : vector<1x1x8x256xbf16> to vector<8x256xbf16>
    %206 = arith.extf %205 : vector<8x256xbf16> to vector<8x256xf32>
    %207 = arith.addf %203, %206 : vector<8x256xf32>
    %c0_188 = arith.constant 0 : index
    %c0_189 = arith.constant 0 : index
    %c0_190 = arith.constant 0 : index
    %c0_191 = arith.constant 0 : index
    %208 = vector.load %arg11[%c0_188, %c0_189, %c0_190, %c0_191] : memref<1x2x8x256xf32, #tpu.memory_space<vmem>>, vector<1x1x8x256xf32>
    %209 = vector.shape_cast %208 : vector<1x1x8x256xf32> to vector<8x256xf32>
    %210 = vector.shape_cast %207 : vector<8x256xf32> to vector<1x1x8x256xf32>
    tpu.vector_store %arg11[%c0_188, %c0_189, %c0_190, %c0_191], %210 {strides = array<i32>} : memref<1x2x8x256xf32, #tpu.memory_space<vmem>>, vector<1x1x8x256xf32>,
    %211 = vector.extract_strided_slice %202 {offsets = [0, 256], sizes = [8, 256], strides = [1, 1]} : vector<8x512xf32> to vector<8x256xf32>
    %c0_192 = arith.constant 0 : index
    %c1_193 = arith.constant 1 : index
    %c0_194 = arith.constant 0 : index
    %c0_195 = arith.constant 0 : index
    %212 = vector.load %arg2[%c0_192, %c1_193, %c0_194, %c0_195] : memref<1x2x8x256xbf16, #tpu.memory_space<vmem>>, vector<1x1x8x256xbf16>
    %213 = vector.shape_cast %212 : vector<1x1x8x256xbf16> to vector<8x256xbf16>
    %214 = arith.extf %213 : vector<8x256xbf16> to vector<8x256xf32>
    %215 = arith.addf %211, %214 : vector<8x256xf32>
    %c0_196 = arith.constant 0 : index
    %c1_197 = arith.constant 1 : index
    %c0_198 = arith.constant 0 : index
    %c0_199 = arith.constant 0 : index
    %216 = vector.load %arg11[%c0_196, %c1_197, %c0_198, %c0_199] : memref<1x2x8x256xf32, #tpu.memory_space<vmem>>, vector<1x1x8x256xf32>
    %217 = vector.shape_cast %216 : vector<1x1x8x256xf32> to vector<8x256xf32>
    %218 = vector.shape_cast %215 : vector<8x256xf32> to vector<1x1x8x256xf32>
    tpu.vector_store %arg11[%c0_196, %c1_197, %c0_198, %c0_199], %218 {strides = array<i32>} : memref<1x2x8x256xf32, #tpu.memory_space<vmem>>, vector<1x1x8x256xf32>,
    return
  }
  func.func @transform_0(%arg0: i32, %arg1: i32) -> (i32, i32, i32, i32) {
    %c0_i32 = arith.constant 0 : i32
    %c0_i32_0 = arith.constant 0 : i32
    %c0_i32_1 = arith.constant 0 : i32
    return %arg0, %arg1, %c0_i32, %c0_i32_0 : i32, i32, i32, i32
  }
  func.func @transform_1(%arg0: i32, %arg1: i32) -> (i32, i32, i32) {
    %c0_i32 = arith.constant 0 : i32
    %c0_i32_0 = arith.constant 0 : i32
    %c0_i32_1 = arith.constant 0 : i32
    return %arg0, %c0_i32, %c0_i32_0 : i32, i32, i32
  }
  func.func @transform_2(%arg0: i32, %arg1: i32) -> (i32, i32, i32) {
    %c0_i32 = arith.constant 0 : i32
    %c0_i32_0 = arith.constant 0 : i32
    %c0_i32_1 = arith.constant 0 : i32
    return %arg0, %c0_i32, %c0_i32_0 : i32, i32, i32
  }
  func.func @transform_3(%arg0: i32, %arg1: i32) -> (i32, i32, i32) {
    %c0_i32 = arith.constant 0 : i32
    %c0_i32_0 = arith.constant 0 : i32
    %c0_i32_1 = arith.constant 0 : i32
    return %arg0, %c0_i32, %c0_i32_0 : i32, i32, i32
  }
  func.func @transform_4(%arg0: i32, %arg1: i32) -> (i32, i32, i32) {
    %c0_i32 = arith.constant 0 : i32
    %c0_i32_0 = arith.constant 0 : i32
    %c0_i32_1 = arith.constant 0 : i32
    return %arg0, %c0_i32, %c0_i32_0 : i32, i32, i32
  }
  func.func @transform_5(%arg0: i32, %arg1: i32) -> (i32, i32, i32) {
    %c0_i32 = arith.constant 0 : i32
    %c0_i32_0 = arith.constant 0 : i32
    %c0_i32_1 = arith.constant 0 : i32
    return %arg0, %c0_i32, %c0_i32_0 : i32, i32, i32
  }
  func.func @transform_6(%arg0: i32, %arg1: i32) -> (i32, i32, i32) {
    %c0_i32 = arith.constant 0 : i32
    %c0_i32_0 = arith.constant 0 : i32
    %c0_i32_1 = arith.constant 0 : i32
    return %arg0, %c0_i32, %c0_i32_0 : i32, i32, i32
  }
  func.func @transform_7(%arg0: i32, %arg1: i32) -> (i32, i32) {
    %c0_i32 = arith.constant 0 : i32
    %c0_i32_0 = arith.constant 0 : i32
    %c0_i32_1 = arith.constant 0 : i32
    return %c0_i32, %c0_i32_0 : i32, i32
  }
  func.func @transform_8(%arg0: i32, %arg1: i32) -> (i32, i32) {
    %c0_i32 = arith.constant 0 : i32
    %c0_i32_0 = arith.constant 0 : i32
    %c0_i32_1 = arith.constant 0 : i32
    return %c0_i32, %c0_i32_0 : i32, i32
  }
  func.func @transform_9(%arg0: i32, %arg1: i32) -> (i32, i32, i32, i32) {
    %c0_i32 = arith.constant 0 : i32
    %c0_i32_0 = arith.constant 0 : i32
    %c0_i32_1 = arith.constant 0 : i32
    return %arg0, %arg1, %c0_i32, %c0_i32_0 : i32, i32, i32, i32
  }
}

</mosaic_0001>

<bundles_post_ra>
// kernel: squeeze.3
= control target key start
LH: loop header
LB: loop body
LE: loop exit
PB: predicated region body
PF: predicated region fallthrough
CT: control target
= control target key end

     0   :  { %s357_s8 = smov 112   ;;  %s358_s11 = smov 96   ;;  %s474_s0 = inlined_call_operand.vmem [shape: f32[1,2,8,256], index: 0, kind: input, shape index: {}]   ;;  %s475_s1 = inlined_call_operand.hbm [shape: f32[2,8,16,16], index: 1, kind: output, shape index: {}]  }
   0x1   :  { %v42_v0 = vld.sshfl [vmem:[%s474_s0] sm:$0xff pattern:$0xb3a29180]   ;;  %v303_v1 = vld.sshfl [vmem:[%s474_s0 + $0x10] sm:$0xff pattern:$0xb3a29180]  }
   0x2   :  { %43 = vrot.lane.b32.xlu0 %v42_v0, %s357_s8  ;;  %78 = vrot.lane.b32.xlu2 %v42_v0, %s358_s11 }
   0x3   :  { %61 = vrot.lane.b32.xlu1 %v303_v1, %s357_s8 }
   0x4   :  { %2 = vsyncpa [#allocation1], 0  ;;  %v302_v2 = vld.sshfl [vmem:[%s474_s0 + $0x4] sm:$0xff pattern:$0xb3a29180]   ;;  %s359_s16 = smov 80  }
   0x5   :  { %v304_v3 = vld.sshfl [vmem:[%s474_s0 + $0x14] sm:$0xff pattern:$0xb3a29180]   ;;  %s360_s17 = smov 64   ;;  %s361_s18 = smov 48   ;;  %vm4_vm0 = vcmask 130048  }
   0x6   :  { %s362_s19 = smov 32   ;;  %s363_s20 = smov 16   ;;  %v3_v25 = vld [vmem:[%s474_s0] sm:$0xff]   ;;  %v299_v28 = vld [vmem:[%s474_s0 + $0x8] sm:$0xff]   ;;  %v300_v31 = vld [vmem:[%s474_s0 + $0x10] sm:$0xff]  }
   0x7   :  { %5 = vst.msk [vmem:[#allocation0] ss:$16 sm:$0x3] %vm4_vm0, %v3_v25   ;;  %v301_v34 = vld [vmem:[%s474_s0 + $0x18] sm:$0xff]   ;;  %s364_s0 = smov [#allocation0]   ;;  %s292_s1 = sshll.u32 %s475_s1, 4  ;;  %s293_s1 = int_to_ptr.hbm [resolvable:$true] %s292_s1 }
   0x8   :  { %6 = vst.msk [vmem:[#allocation0] ss:$16 sm:$0xc] %vm4_vm0, %v3_v25   ;;  %s290_s29 = sshll.u32 %s364_s0, 4  ;;  %s291_s29 = int_to_ptr.vmem [resolvable:$true] %s290_s29 }
   0x9   :  { %7 = vst.msk [vmem:[#allocation0] ss:$16 sm:$0x30] %vm4_vm0, %v3_v25  }
   0xa   :  { %52 = vrot.lane.b32.xlu0 %v302_v2, %s357_s8  ;;  %87 = vrot.lane.b32.xlu2 %v302_v2, %s358_s11  ;;  %8 = vst.msk [vmem:[#allocation0] ss:$16 sm:$0xc0] %vm4_vm0, %v3_v25  }
   0xb   :  { %70 = vrot.lane.b32.xlu1 %v304_v3, %s357_s8  ;;  %13 = vst.msk [vmem:[#allocation0 + $0x8] ss:$16 sm:$0x3] %vm4_vm0, %v299_v28  }
   0xc   :  { %15 = vst.msk [vmem:[#allocation0 + $0x8] ss:$16 sm:$0xc] %vm4_vm0, %v299_v28  }
   0xd   :  { %17 = vst.msk [vmem:[#allocation0 + $0x8] ss:$16 sm:$0x30] %vm4_vm0, %v299_v28  }
   0xe   :  { %19 = vst.msk [vmem:[#allocation0 + $0x8] ss:$16 sm:$0xc0] %vm4_vm0, %v299_v28  }
   0xf   :  { %24 = vst.msk [vmem:[#allocation0 + $0x80] ss:$16 sm:$0x3] %vm4_vm0, %v300_v31  }
  0x10   :  { %26 = vst.msk [vmem:[#allocation0 + $0x80] ss:$16 sm:$0xc] %vm4_vm0, %v300_v31  }
  0x11   :  { %28 = vst.msk [vmem:[#allocation0 + $0x80] ss:$16 sm:$0x30] %vm4_vm0, %v300_v31  }
  0x12   :  { %96 = vrot.lane.b32.xlu0 %v303_v1, %s358_s11  ;;  %113 = vrot.lane.b32.xlu2 %v42_v0, %s359_s16  ;;  %30 = vst.msk [vmem:[#allocation0 + $0x80] ss:$16 sm:$0xc0] %vm4_vm0, %v300_v31  }
  0x13   :  { %105 = vrot.lane.b32.xlu1 %v304_v3, %s358_s11  ;;  %35 = vst.msk [vmem:[#allocation0 + $0x88] ss:$16 sm:$0x3] %vm4_vm0, %v301_v34  }
  0x14   :  { %37 = vst.msk [vmem:[#allocation0 + $0x88] ss:$16 sm:$0xc] %vm4_vm0, %v301_v34  }
  0x15   :  { %39 = vst.msk [vmem:[#allocation0 + $0x88] ss:$16 sm:$0x30] %vm4_vm0, %v301_v34  }
  0x16   :  { %41 = vst.msk [vmem:[#allocation0 + $0x88] ss:$16 sm:$0xc0] %vm4_vm0, %v301_v34  }
  0x1a   :  { %122 = vrot.lane.b32.xlu0 %v302_v2, %s359_s16  ;;  %140 = vrot.lane.b32.xlu2 %v304_v3, %s359_s16 }
  0x1b   :  { %131 = vrot.lane.b32.xlu1 %v303_v1, %s359_s16 }
  0x22   :  { %148 = vrot.lane.b32.xlu0 %v42_v0, %s360_s17  ;;  %166 = vrot.lane.b32.xlu2 %v303_v1, %s360_s17 }
  0x23   :  { %157 = vrot.lane.b32.xlu1 %v302_v2, %s360_s17 }
  0x2a   :  { %175 = vrot.lane.b32.xlu0 %v304_v3, %s360_s17  ;;  %192 = vrot.lane.b32.xlu2 %v302_v2, %s361_s18 }
  0x2b   :  { %183 = vrot.lane.b32.xlu1 %v42_v0, %s361_s18 }
  0x32   :  { %201 = vrot.lane.b32.xlu0 %v303_v1, %s361_s18  ;;  %218 = vrot.lane.b32.xlu2 %v42_v0, %s362_s19 }
  0x33   :  { %210 = vrot.lane.b32.xlu1 %v304_v3, %s361_s18 }
  0x3a   :  { %227 = vrot.lane.b32.xlu0 %v302_v2, %s362_s19  ;;  %245 = vrot.lane.b32.xlu2 %v304_v3, %s362_s19 }
  0x3b   :  { %236 = vrot.lane.b32.xlu1 %v303_v1, %s362_s19 }
  0x42   :  { %253 = vrot.lane.b32.xlu0 %v42_v0, %s363_s20  ;;  %271 = vrot.lane.b32.xlu2 %v303_v1, %s363_s20 }
  0x43   :  { %262 = vrot.lane.b32.xlu1 %v302_v2, %s363_s20 }
  0x4a   :  { %280 = vrot.lane.b32.xlu0 %v304_v3, %s363_s20 }
  0x5c   :  { %v79_v4 = vpop.permute.xlu2 %78  }
  0x5d   :  { %82 = vst.msk [vmem:[#allocation0 + $0x2] ss:$8 sm:$0xf] %vm4_vm0, %v79_v4  }
  0x5e   :  { %84 = vst.msk [vmem:[#allocation0 + $0x2] ss:$8 sm:$0xf0] %vm4_vm0, %v79_v4  }
  0x64   :  { %v88_v5 = vpop.permute.xlu2 %87  }
  0x65   :  { %91 = vst.msk [vmem:[#allocation0 + $0x42] ss:$8 sm:$0xf] %vm4_vm0, %v88_v5  }
  0x66   :  { %93 = vst.msk [vmem:[#allocation0 + $0x42] ss:$8 sm:$0xf0] %vm4_vm0, %v88_v5  }
  0x6c   :  { %v114_v6 = vpop.permute.xlu2 %113  }
  0x6d   :  { %117 = vst.msk [vmem:[#allocation0 + $0x3] ss:$8 sm:$0xf] %vm4_vm0, %v114_v6  }
  0x6e   :  { %119 = vst.msk [vmem:[#allocation0 + $0x3] ss:$8 sm:$0xf0] %vm4_vm0, %v114_v6  }
  0x74   :  { %v44_v7 = vpop.permute.xlu0 %43   ;;  %v141_v8 = vpop.permute.xlu2 %140  }
  0x75   :  { %47 = vst.msk [vmem:[#allocation0 + $0x1] ss:$8 sm:$0xf] %vm4_vm0, %v44_v7   ;;  %v62_v9 = vpop.permute.xlu1 %61  }
  0x76   :  { %49 = vst.msk [vmem:[#allocation0 + $0x1] ss:$8 sm:$0xf0] %vm4_vm0, %v44_v7  }
  0x77   :  { %65 = vst.msk [vmem:[#allocation0 + $0x81] ss:$8 sm:$0xf] %vm4_vm0, %v62_v9  }
  0x78   :  { %67 = vst.msk [vmem:[#allocation0 + $0x81] ss:$8 sm:$0xf0] %vm4_vm0, %v62_v9  }
  0x79   :  { %144 = vst.msk [vmem:[#allocation0 + $0xc3] ss:$8 sm:$0xf] %vm4_vm0, %v141_v8  }
  0x7a   :  { %146 = vst.msk [vmem:[#allocation0 + $0xc3] ss:$8 sm:$0xf0] %vm4_vm0, %v141_v8  }
  0x7c   :  { %v53_v10 = vpop.permute.xlu0 %52   ;;  %v167_v11 = vpop.permute.xlu2 %166  }
  0x7d   :  { %56 = vst.msk [vmem:[#allocation0 + $0x41] ss:$8 sm:$0xf] %vm4_vm0, %v53_v10   ;;  %v71_v12 = vpop.permute.xlu1 %70  }
  0x7e   :  { %58 = vst.msk [vmem:[#allocation0 + $0x41] ss:$8 sm:$0xf0] %vm4_vm0, %v53_v10  }
  0x7f   :  { %74 = vst.msk [vmem:[#allocation0 + $0xc1] ss:$8 sm:$0xf] %vm4_vm0, %v71_v12  }
  0x80   :  { %76 = vst.msk [vmem:[#allocation0 + $0xc1] ss:$8 sm:$0xf0] %vm4_vm0, %v71_v12  }
  0x81   :  { %170 = vst.msk [vmem:[#allocation0 + $0x84] ss:$8 sm:$0xf] %vm4_vm0, %v167_v11  }
  0x82   :  { %172 = vst.msk [vmem:[#allocation0 + $0x84] ss:$8 sm:$0xf0] %vm4_vm0, %v167_v11  }
  0x84   :  { %v97_v13 = vpop.permute.xlu0 %96   ;;  %v193_v14 = vpop.permute.xlu2 %192  }
  0x85   :  { %100 = vst.msk [vmem:[#allocation0 + $0x82] ss:$8 sm:$0xf] %vm4_vm0, %v97_v13   ;;  %v106_v15 = vpop.permute.xlu1 %105  }
  0x86   :  { %102 = vst.msk [vmem:[#allocation0 + $0x82] ss:$8 sm:$0xf0] %vm4_vm0, %v97_v13  }
  0x87   :  { %109 = vst.msk [vmem:[#allocation0 + $0xc2] ss:$8 sm:$0xf] %vm4_vm0, %v106_v15  }
  0x88   :  { %111 = vst.msk [vmem:[#allocation0 + $0xc2] ss:$8 sm:$0xf0] %vm4_vm0, %v106_v15  }
  0x89   :  { %196 = vst.msk [vmem:[#allocation0 + $0x45] ss:$8 sm:$0xf] %vm4_vm0, %v193_v14  }
  0x8a   :  { %198 = vst.msk [vmem:[#allocation0 + $0x45] ss:$8 sm:$0xf0] %vm4_vm0, %v193_v14  }
  0x8c   :  { %v123_v16 = vpop.permute.xlu0 %122   ;;  %v219_v17 = vpop.permute.xlu2 %218  }
  0x8d   :  { %126 = vst.msk [vmem:[#allocation0 + $0x43] ss:$8 sm:$0xf] %vm4_vm0, %v123_v16   ;;  %v132_v18 = vpop.permute.xlu1 %131  }
  0x8e   :  { %128 = vst.msk [vmem:[#allocation0 + $0x43] ss:$8 sm:$0xf0] %vm4_vm0, %v123_v16  }
  0x8f   :  { %135 = vst.msk [vmem:[#allocation0 + $0x83] ss:$8 sm:$0xf] %vm4_vm0, %v132_v18  }
  0x90   :  { %137 = vst.msk [vmem:[#allocation0 + $0x83] ss:$8 sm:$0xf0] %vm4_vm0, %v132_v18  }
  0x91   :  { %222 = vst.msk [vmem:[#allocation0 + $0x6] ss:$8 sm:$0xf] %vm4_vm0, %v219_v17  }
  0x92   :  { %224 = vst.msk [vmem:[#allocation0 + $0x6] ss:$8 sm:$0xf0] %vm4_vm0, %v219_v17  }
  0x94   :  { %v149_v19 = vpop.permute.xlu0 %148   ;;  %v246_v20 = vpop.permute.xlu2 %245  }
  0x95   :  { %152 = vst.msk [vmem:[#allocation0 + $0x4] ss:$8 sm:$0xf] %vm4_vm0, %v149_v19   ;;  %v158_v21 = vpop.permute.xlu1 %157  }
  0x96   :  { %154 = vst.msk [vmem:[#allocation0 + $0x4] ss:$8 sm:$0xf0] %vm4_vm0, %v149_v19  }
  0x97   :  { %161 = vst.msk [vmem:[#allocation0 + $0x44] ss:$8 sm:$0xf] %vm4_vm0, %v158_v21  }
  0x98   :  { %163 = vst.msk [vmem:[#allocation0 + $0x44] ss:$8 sm:$0xf0] %vm4_vm0, %v158_v21  }
  0x99   :  { %249 = vst.msk [vmem:[#allocation0 + $0xc6] ss:$8 sm:$0xf] %vm4_vm0, %v246_v20  }
  0x9a   :  { %251 = vst.msk [vmem:[#allocation0 + $0xc6] ss:$8 sm:$0xf0] %vm4_vm0, %v246_v20  }
  0x9c   :  { %v176_v22 = vpop.permute.xlu0 %175   ;;  %v272_v23 = vpop.permute.xlu2 %271  }
  0x9d   :  { %179 = vst.msk [vmem:[#allocation0 + $0xc4] ss:$8 sm:$0xf] %vm4_vm0, %v176_v22   ;;  %v184_v24 = vpop.permute.xlu1 %183  }
  0x9e   :  { %181 = vst.msk [vmem:[#allocation0 + $0xc4] ss:$8 sm:$0xf0] %vm4_vm0, %v176_v22  }
  0x9f   :  { %187 = vst.msk [vmem:[#allocation0 + $0x5] ss:$8 sm:$0xf] %vm4_vm0, %v184_v24  }
  0xa0   :  { %189 = vst.msk [vmem:[#allocation0 + $0x5] ss:$8 sm:$0xf0] %vm4_vm0, %v184_v24  }
  0xa1   :  { %275 = vst.msk [vmem:[#allocation0 + $0x87] ss:$8 sm:$0xf] %vm4_vm0, %v272_v23  }
  0xa2   :  { %277 = vst.msk [vmem:[#allocation0 + $0x87] ss:$8 sm:$0xf0] %vm4_vm0, %v272_v23  }
  0xa4   :  { %v202_v26 = vpop.permute.xlu0 %201  }
  0xa5   :  { %205 = vst.msk [vmem:[#allocation0 + $0x85] ss:$8 sm:$0xf] %vm4_vm0, %v202_v26   ;;  %v211_v27 = vpop.permute.xlu1 %210  }
  0xa6   :  { %207 = vst.msk [vmem:[#allocation0 + $0x85] ss:$8 sm:$0xf0] %vm4_vm0, %v202_v26  }
  0xa7   :  { %214 = vst.msk [vmem:[#allocation0 + $0xc5] ss:$8 sm:$0xf] %vm4_vm0, %v211_v27  }
  0xa8   :  { %216 = vst.msk [vmem:[#allocation0 + $0xc5] ss:$8 sm:$0xf0] %vm4_vm0, %v211_v27  }
  0xac   :  { %v228_v29 = vpop.permute.xlu0 %227  }
  0xad   :  { %231 = vst.msk [vmem:[#allocation0 + $0x46] ss:$8 sm:$0xf] %vm4_vm0, %v228_v29   ;;  %v237_v30 = vpop.permute.xlu1 %236  }
  0xae   :  { %233 = vst.msk [vmem:[#allocation0 + $0x46] ss:$8 sm:$0xf0] %vm4_vm0, %v228_v29  }
  0xaf   :  { %240 = vst.msk [vmem:[#allocation0 + $0x86] ss:$8 sm:$0xf] %vm4_vm0, %v237_v30  }
  0xb0   :  { %242 = vst.msk [vmem:[#allocation0 + $0x86] ss:$8 sm:$0xf0] %vm4_vm0, %v237_v30  }
  0xb4   :  { %v254_v32 = vpop.permute.xlu0 %253  }
  0xb5   :  { %257 = vst.msk [vmem:[#allocation0 + $0x7] ss:$8 sm:$0xf] %vm4_vm0, %v254_v32   ;;  %v263_v33 = vpop.permute.xlu1 %262  }
  0xb6   :  { %259 = vst.msk [vmem:[#allocation0 + $0x7] ss:$8 sm:$0xf0] %vm4_vm0, %v254_v32  }
  0xb7   :  { %266 = vst.msk [vmem:[#allocation0 + $0x47] ss:$8 sm:$0xf] %vm4_vm0, %v263_v33  }
  0xb8   :  { %268 = vst.msk [vmem:[#allocation0 + $0x47] ss:$8 sm:$0xf0] %vm4_vm0, %v263_v33  }
  0xbc   :  { %v281_v35 = vpop.permute.xlu0 %280  }
  0xbd   :  { %284 = vst.msk [vmem:[#allocation0 + $0xc7] ss:$8 sm:$0xf] %vm4_vm0, %v281_v35  }
  0xbe   :  { %286 = vst.msk [vmem:[#allocation0 + $0xc7] ss:$8 sm:$0xf0] %vm4_vm0, %v281_v35  }
  0xbf   :  { %295 = dma.vmem_to_hbm [thread:$0]  %s291_s29, 4096, %s293_s1, [#allocation1]  }
  0xc0   :  { %355 = dma.done.wait [#allocation1], 4096  }
  0xc1   :  { %356 = vsyncadd [#allocation1], 4294963200 }
  0xc2   :  { %298 = vsyncpa [#allocation1], 1 }

// kernel: basic_block_forward.1
= control target key start
LH: loop header
LB: loop body
LE: loop exit
PB: predicated region body
PF: predicated region fallthrough
CT: control target
= control target key end

     0   :  { %s2229_s30 = smov 0   ;;  %s2231_s10 = smov 0   ;;  %s2706_s0 = inlined_call_operand.vmem [shape: bf16[2,2,8,256], index: 0, kind: input, shape index: {}]   ;;  %s2707_s1 = inlined_call_operand.vmem [shape: f32[2,8,1], index: 1, kind: input, shape index: {}]   ;;  %s2708_s2 = inlined_call_operand.vmem [shape: f32[2,8,1], index: 2, kind: input, shape index: {}]   ;;  %s2709_s3 = inlined_call_operand.vmem [shape: f32[2,8,1], index: 3, kind: input, shape index: {}]   ;;  %s2710_s4 = inlined_call_operand.vmem [shape: f32[2,8,1], index: 4, kind: input, shape index: {}]   ;;  %s2711_s5 = inlined_call_operand.vmem [shape: f32[2,8,1], index: 5, kind: input, shape index: {}]   ;;  %s2712_s6 = inlined_call_operand.vmem [shape: f32[2,8,1], index: 6, kind: input, shape index: {}]   ;;  %s2713_s7 = inlined_call_operand.vmem [shape: bf16[8,72], index: 7, kind: input, shape index: {}]   ;;  %s2714_s8 = inlined_call_operand.vmem [shape: bf16[8,72], index: 8, kind: input, shape index: {}]   ;;  %s2715_s9 = inlined_call_operand.vmem [shape: f32[2,2,8,256], index: 9, kind: output, shape index: {}]  }
   0x1   :  { %s2233_s11 = smov 0  }
   0x2 LB: > { %s31_s12 = sadd.s32 1, %s2157_s10  ;;  %p1881_p0 = scmp.ge.s32.totalorder %s2161_s11, 1  ;;  %s2161_s11 = sphi %s2233_s11, %s19_s11   ;;  %s2157_s10 = sphi %s2231_s10, %s2719_s10   ;;  %s2153_s30 = sphi %s2229_s30, %s2718_s30  }
   0x3   : > { %p33_p1 = scmp.ge.s32.totalorder %s31_s12, 2  ;;  %p363_p2 = scmp.lt.s32.totalorder %s2161_s11, 3 }
   0x5   : > { %s2721_s12 = smov (%p33_p1, %s31_s12), 0  ;;  %p364_p3 = pnand %p1881_p0, %p363_p2 }
   0x6   : > { %p434_p4 = scmp.lt.s32.totalorder (!%p364_p3), %s2153_s30, 1  ;;  %s2165_s20 = smov (!%p364_p3), 2  }
   0x7   : > { %367 = sbr.rel (%p364_p3) target bundleno = 1079 (0x437), region = 56  ;;  %s2166_s21 = smov (!%p364_p3), 18  }
   0x8   : > { %s2167_s22 = smov (!%p364_p3), 34   ;;  %s2168_s27 = smov (!%p364_p3), 32  }
   0x9   : > { %s2169_s28 = smov (!%p364_p3), 16   ;;  %s2170_s29 = smov (!%p364_p3), 17  }
   0xa   : > { %s2171_s14 = smov (!%p364_p3), 95   ;;  %s2172_s15 = smov (!%p364_p3), 111  }
   0xb   : > { %s2174_s17 = smov (!%p364_p3), 96   ;;  %s2175_s18 = smov (!%p364_p3), 94  }
   0xc   : > { %v2163_v0 = vmov 0   ;;  %s2723_s30 = smov (!%p434_p4, %s2153_s30), 1  ;;  %v480_v3 = vlaneseq  ;;  %v2164_v8 = vmov 0.0   ;;  %vm521_vm4 = vcmask 134144  }
   0xd   : > { %2112 = vset.pattern.permute.xlu0 %v2163_v0  ;;  %2138 = vset.pattern.permute.xlu2 %v2163_v0  ;;  %s2252_s13 = sshll.u32 %s2723_s30, 3  ;;  %s2038_s23 = sshll.u32 %s2723_s30, 4  ;;  %vm523_vm5 = vcmask 273544   ;;  %525 = vst.msk [vmem:[#allocation2 + $0xc] sm:$0xf] %vm521_vm4, %v2163_v0  ;;  %vm555_vm6 = vcmask 1043592  }
   0xe   : > { %s447_s16 = scalar_lea.vmem %s2707_s1, %s2252_s13  ;;  %s451_s19 = scalar_lea.vmem %s2708_s2, %s2252_s13  ;;  %v481_v4 = vand.u32 127, %v480_v3  ;;  %526 = vst.msk [vmem:[#allocation2 + $0x14] sm:$0xf] %vm523_vm5, %v2163_v0  ;;  %vm556_vm7 = vcmask 1047556   ;;  %vm551_vm8 = vcmask 138240   ;;  %vm830_vm10 = vcmask 261120  }
   0xf   : > { %v527_v1 = vld [vmem:[%s447_s16] sm:$0xff]  ;;  %s2272_s26 = scalar_lea.vmem %s2706_s0, %s2038_s23  ;;  %522 = vst.msk [vmem:[#allocation2] sm:$0xf] %vm521_vm4, %v2163_v0  ;;  %vm2286_vm9 = vmor %vm556_vm7, %vm555_vm6  ;;  %s2173_s16 = smov 127   ;;  %vm776_vm11 = vcmask 146432   ;;  %vm913_vm12 = vcmask 277504  }
  0x10   : > { %534 = vperm.xlu0 %2112, %v527_v1   ;;  %v528_v2 = vld [vmem:[%s451_s19] sm:$0xff]  ;;  %v482_v5 = vadd.s32 128, %v481_v4  ;;  %v487_v6 = vand.u32 15, %v481_v4  ;;  %v1896_v16 = vld [vmem:[%s2272_s26 + $0x8] sm:$0xff]  ;;  %524 = vst.msk [vmem:[#allocation2 + $0x8] sm:$0xf] %vm523_vm5, %v2163_v0  ;;  %s459_s24 = scalar_lea.vmem %s2710_s4, %s2252_s13 }
  0x11   : > { %v562_v17 = vunpack.c.l.bf16 %v1896_v16  ;;  %v563_v18 = vunpack.c.h.bf16 %v1896_v16  ;;  %v529_v19 = vld [vmem:[%s2272_s26] sm:$0xff]  ;;  %s2176_s19 = smov 110   ;;  %vm693_vm13 = vcmask 130048   ;;  %vm637_vm14 = vcmask 15360  }
  0x12   : > { %v494_v7 = vand.u32 15, %v482_v5  ;;  %vm514_vm0 = vcmp.lt.s32.totalorder %v487_v6, 15  ;;  %vm507_vm2 = vcmp.gt.s32.totalorder %v487_v6, 0  ;;  %v530_v23 = vunpack.c.l.bf16 %v529_v19 }
  0x13   : > { %v1894_v9 = vsel %vm514_vm0, 1.0, %v2164_v8  ;;  %v2262_v12 = vsel %vm507_vm2, 1.0, %v2164_v8  ;;  %v531_v24 = vunpack.c.h.bf16 %v529_v19  ;;  %vm604_vm15 = vcmask 1043456  }
  0x14   : > { %vm515_vm1 = vcmp.lt.s32.totalorder %v494_v7, 15  ;;  %vm508_vm3 = vcmp.gt.s32.totalorder %v494_v7, 0  ;;  %vm886_vm0 = vcmask 777216   ;;  %vm749_vm2 = vcmask 908288  }
  0x15   : > { %v1895_v10 = vsel %vm515_vm1, 1.0, %v2164_v8  ;;  %v2264_v13 = vsel %vm508_vm3, 1.0, %v2164_v8  ;;  %vm606_vm1 = vcmask 1039360   ;;  %vm849_vm3 = vcmask 785408  }
  0x16   : > { %v2128_v11 = vpack.i.bf16 %v1895_v10, %v1894_v9  ;;  %v2118_v14 = vpack.i.bf16 %v2264_v13, %v2262_v12  ;;  %vm795_vm5 = vcmask 900096   ;;  %vm712_vm6 = vcmask 916480  }
  0x17   : > { %vm932_vm7 = vcmask 769024  }
  0x18   : > { %541 = vperm.xlu0 %2112, %v528_v2   ;;  %2129 = vrot.lane.b32.xlu1 %v2128_v11, %s2165_s20  ;;  %s2177_s20 = smov 126  }
  0x19   : > { %2114 = vrot.lane.b32.xlu2 %v2128_v11, %s2167_s22 }
  0x20   : > { %2124 = vrot.lane.b32.xlu0 %v2128_v11, %s2166_s21  ;;  %s2178_s21 = smov 112  }
  0x21   : > { %2119 = vrot.lane.b32.xlu2 %v2118_v14, %s2168_s27 }
  0x29   : > { %2134 = vrot.lane.b32.xlu2 %v2118_v14, %s2169_s28  ;;  %s455_s28 = scalar_lea.vmem %s2709_s3, %s2252_s13 }
  0x73   : > { %v2300_v43 = vpop.permute.xlu2 %2114 }
  0x74   : > { %v2332_v4 = vunpack.i.h.bf16 %v2300_v43 }
  0x7b   : > { %v2120_v51 = vpop.permute.xlu2 %2119 }
  0x7c   : > { %v2317_v54 = vunpack.i.h.bf16 %v2120_v51  ;;  %v2343_v14 = vunpack.i.l.bf16 %v2120_v51 }
  0x82   : > { %v535_v15 = vpop.permute.xlu0 %534 }
  0x83   : > { %v564_v20 = vmul.f32 %v562_v17, %v535_v15  ;;  %v565_v21 = vmul.f32 %v563_v18, %v535_v15  ;;  %v537_v28 = vmul.f32 %v535_v15, %v530_v23  ;;  %v538_v29 = vmul.f32 %v535_v15, %v531_v24  ;;  %v2135_v17 = vpop.permute.xlu2 %2134 }
  0x8a   : > { %v542_v22 = vpop.permute.xlu0 %541  ;;  %v2284_v33 = vpop.permute.xlu1 %2129 }
  0x8b   : > { %v566_v25 = vadd.f32 %v564_v20, %v542_v22  ;;  %v567_v26 = vadd.f32 %v565_v21, %v542_v22  ;;  %v544_v30 = vadd.f32 %v542_v22, %v537_v28  ;;  %v545_v31 = vadd.f32 %v542_v22, %v538_v29 }
  0x8c   : > { %v2346_v22 = vunpack.i.h.bf16 %v2135_v17 }
  0x8d   : > { %v568_v27 = vpack.c.bf16 %v567_v26, %v566_v25  ;;  %v546_v32 = vpack.c.bf16 %v545_v31, %v544_v30  ;;  %v2350_v25 = vsel %vm830_vm10, %v2343_v14, %v2317_v54  ;;  %v2353_v26 = vunpack.i.h.bf16 %v2284_v33 }
  0x8e   : > { %vm656_vm10 = vcmask 1031168  }
  0x8f   : > { %570 = vrot.lane.b32.xlu1 %v568_v27, %s2170_s29 }
  0x92   : > { %v2125_v1 = vpop.permute.xlu0 %2124 }
  0x93   : > { %v2334_v7 = vunpack.i.h.bf16 %v2125_v1  ;;  %v2363_v30 = vunpack.i.l.bf16 %v2125_v1 }
  0x97   : > { %548 = vrot.lane.b32.xlu1 %v546_v32, %s2170_s29 }
 0x101   : > { %v571_v34 = vpop.permute.xlu1 %570 }
 0x102   : > { %v572_v36 = vrot.slane %v571_v34, 4 }
 0x104   : > { %v573_v37 = vsel %vm551_vm8, %v572_v36, %v571_v34  ;;  %577 = vst.msk [vmem:[#allocation2 + $0x14] sm:$0xf] %vm521_vm4, %v572_v36  ;;  %v2367_v34 = vunpack.i.l.bf16 %v2300_v43 }
 0x105   : > { %576 = vst.msk [vmem:[#allocation2 + $0xc] sm:$0xff] %vm2286_vm9, %v573_v37 }
 0x109   : > { %v549_v38 = vpop.permute.xlu1 %548 }
 0x10a   : > { %v550_v39 = vrot.slane %v549_v38, 4 }
 0x10b   : > { %v891_v40 = vld [vmem:[#allocation2 + $0x14] sm:$0xf] }
 0x10c   : > { %v754_v41 = vld [vmem:[#allocation2 + $0x14] sm:$0xf]  ;;  %v552_v42 = vsel %vm551_vm8, %v550_v39, %v549_v38  ;;  %559 = vst.msk [vmem:[#allocation2 + $0x8] sm:$0xf] %vm521_vm4, %v550_v39  ;;  %896 = vrot.lane.b32.xlu2 %v891_v40, %s2171_s14  ;;  %v587_v44 = vld [vmem:[#allocation2 + $0xc] sm:$0xff]  ;;  %v2371_v40 = vsel %vm776_vm11, %v2363_v30, %v2334_v7  ;;  %vm1067_vm11 = vcmask 588800  }
 0x10d   : > { %759 = vrot.lane.b32.xlu1 %v754_v41, %s2172_s15  ;;  %558 = vst.msk [vmem:[#allocation2] sm:$0xff] %vm2286_vm9, %v552_v42  ;;  %v611_v45 = vld [vmem:[#allocation2 + $0x14] sm:$0xf]  ;;  %v2307_v49 = vunpack.c.l.bf16 %v587_v44  ;;  %v2309_v50 = vunpack.c.h.bf16 %v587_v44  ;;  %v2377_v41 = vsel %vm913_vm12, %v2367_v34, %v2332_v4 }
 0x10e   : > { %v854_v48 = vld [vmem:[#allocation2 + $0x14] sm:$0xf] }
 0x10f   : > { %v857_v56 = vunpack.c.l.bf16 %v854_v48  ;;  %v590_v57 = vmul.f32 %v2262_v12, %v2307_v49  ;;  %v591_v58 = vmul.f32 %v2264_v13, %v2309_v50  ;;  %v937_v63 = vld [vmem:[#allocation2 + $0x14] sm:$0xf]  ;;  %v858_v27 = vmul.f32 %v2343_v14, %v2307_v49 }
 0x110   : > { %v800_v2 = vld [vmem:[#allocation2 + $0x14] sm:$0xf]  ;;  %v940_v6 = vunpack.c.l.bf16 %v937_v63  ;;  %v859_v28 = vmul.f32 %v2350_v25, %v2309_v50  ;;  %v804_v42 = vmul.f32 %v2363_v30, %v2307_v49  ;;  %v805_v43 = vmul.f32 %v2371_v40, %v2309_v50 }
 0x111   : > { %v860_v61 = vmul.f32 %v2317_v54, %v857_v56  ;;  %v592_v0 = vpack.c.bf16 %v591_v58, %v590_v57  ;;  %v803_v9 = vunpack.c.l.bf16 %v800_v2  ;;  %v661_v16 = vld [vmem:[#allocation2 + $0x14] sm:$0xf]  ;;  %v942_v48 = vmul.f32 %v2377_v41, %v2309_v50 }
 0x112   : > { %v943_v11 = vmul.f32 %v2332_v4, %v940_v6  ;;  %v717_v18 = vld [vmem:[#allocation2 + $0x14] sm:$0xf]  ;;  %v664_v21 = vunpack.c.l.bf16 %v661_v16  ;;  %v861_v36 = vpack.c.bf16 %v859_v28, %v858_v27  ;;  %v2408_v2 = vunpack.i.l.bf16 %v2284_v33 }
 0x113   : > { %v876_v46 = vld [vmem:[#allocation2 + $0x8] sm:$0xf]  ;;  %593 = vst [vmem:[#allocation3 + $0x8] sm:$0xff] %v592_v0  ;;  %v862_v8 = vpack.c.bf16 %v860_v61, %v860_v61  ;;  %v806_v15 = vmul.f32 %v2334_v7, %v803_v9  ;;  %v720_v24 = vunpack.c.l.bf16 %v717_v18 }
 0x114   : > { %616 = vrot.lane.b32.xlu2 %v611_v45, %s2173_s16  ;;  %881 = vrot.lane.b32.xlu0 %v876_v46, %s2171_s14  ;;  %v2305_v47 = vld [vmem:[#allocation2] sm:$0xff]  ;;  %v739_v55 = vld [vmem:[#allocation2 + $0x8] sm:$0xf]  ;;  %v945_v20 = vpack.c.bf16 %v943_v11, %v943_v11  ;;  %v667_v29 = vmul.f32 %v2353_v26, %v664_v21  ;;  %v2385_v45 = vunpack.i.l.bf16 %v2135_v17  ;;  %v941_v46 = vmul.f32 %v2367_v34, %v2307_v49 }
 0x115   : > { %894 = vrot.lane.b32.xlu1 %v587_v44, %s2171_s14  ;;  %v2312_v52 = vunpack.c.l.bf16 %v2305_v47  ;;  %v2315_v53 = vunpack.c.h.bf16 %v2305_v47  ;;  %v905_v62 = vld [vmem:[#allocation2 + $0x8] sm:$0xf]  ;;  %v808_v23 = vpack.c.bf16 %v806_v15, %v806_v15  ;;  %v723_v31 = vmul.f32 %v2346_v22, %v720_v24 }
 0x116   : > { %v908_v5 = vunpack.c.l.bf16 %v905_v62  ;;  %v822_v32 = vld [vmem:[#allocation2 + $0x8] sm:$0xf]  ;;  %v669_v37 = vpack.c.bf16 %v667_v29, %v667_v29  ;;  %v944_v57 = vpack.c.bf16 %v942_v48, %v941_v46  ;;  %v2415_v9 = vsel %vm637_vm14, %v2408_v2, %v2353_v26 }
 0x117   : > { %v583_v59 = vmul.f32 %v2262_v12, %v2312_v52  ;;  %v584_v60 = vmul.f32 %v2264_v13, %v2315_v53  ;;  %v825_v38 = vunpack.c.l.bf16 %v822_v32  ;;  %v725_v39 = vpack.c.bf16 %v723_v31, %v723_v31  ;;  %v625_v51 = vld [vmem:[#allocation2 + $0x8] sm:$0xf] }
 0x118   : > { %v920_v10 = vmul.f32 %v2332_v4, %v908_v5  ;;  %v628_v58 = vunpack.c.l.bf16 %v625_v51  ;;  %v918_v62 = vmul.f32 %v2367_v34, %v2312_v52  ;;  %v919_v63 = vmul.f32 %v2377_v41, %v2315_v53  ;;  %v768_v1 = vld [vmem:[#allocation2 + $0x8] sm:$0xf] }
 0x119   : > { %v585_v3 = vpack.c.bf16 %v584_v60, %v583_v59  ;;  %v2393_v59 = vsel %vm693_vm13, %v2385_v45, %v2346_v22  ;;  %v721_v60 = vmul.f32 %v2385_v45, %v2307_v49  ;;  %v771_v6 = vunpack.c.l.bf16 %v768_v1  ;;  %v683_v17 = vld [vmem:[#allocation2 + $0x8] sm:$0xf] }
 0x11a   : > { %v922_v19 = vpack.c.bf16 %v920_v10, %v920_v10  ;;  %v722_v61 = vmul.f32 %v2393_v59, %v2309_v50  ;;  %v644_v0 = vmul.f32 %v2353_v26, %v628_v58  ;;  %v921_v5 = vpack.c.bf16 %v919_v63, %v918_v62 }
 0x11b   : > { %586 = vst [vmem:[#allocation3] sm:$0xff] %v585_v3  ;;  %v783_v10 = vmul.f32 %v2334_v7, %v771_v6  ;;  %v642_v33 = vmul.f32 %v2408_v2, %v2312_v52  ;;  %v643_v11 = vmul.f32 %v2415_v9, %v2315_v53  ;;  %v665_v15 = vmul.f32 %v2408_v2, %v2307_v49 }
 0x11c   : > { %744 = vrot.lane.b32.xlu2 %v739_v55, %s2172_s15  ;;  %757 = vrot.lane.b32.xlu0 %v587_v44, %s2172_s15  ;;  %v807_v55 = vpack.c.bf16 %v805_v43, %v804_v42  ;;  %v724_v3 = vpack.c.bf16 %v722_v61, %v721_v60  ;;  %v666_v16 = vmul.f32 %v2415_v9, %v2309_v50  ;;  %v1146_v42 = vld [vmem:[%s459_s24] sm:$0xff] }
 0x11d   : > { %614 = vrot.lane.b32.xlu1 %v587_v44, %s2173_s16  ;;  %v837_v44 = vmul.f32 %v2317_v54, %v825_v38  ;;  %v785_v18 = vpack.c.bf16 %v783_v10, %v783_v10  ;;  %v699_v49 = vmul.f32 %v2393_v59, %v2315_v53  ;;  %v835_v50 = vmul.f32 %v2343_v14, %v2312_v52  ;;  %v595_v38 = vld [vmem:[#allocation2 + $0x8] sm:$0xf] }
 0x11e   : > { %v668_v21 = vpack.c.bf16 %v666_v16, %v665_v15  ;;  %v836_v27 = vmul.f32 %v2350_v25, %v2315_v53  ;;  %v781_v32 = vmul.f32 %v2363_v30, %v2312_v52 }
 0x11f   : > { %v839_v56 = vpack.c.bf16 %v837_v44, %v837_v44 }
 0x120   : > { %v838_v31 = vpack.c.bf16 %v836_v27, %v835_v50 }
 0x124   : > { %879 = vrot.lane.b32.xlu2 %v2305_v47, %s2171_s14  ;;  %867 = vrot.lane.b32.xlu0 %v862_v8, %s2174_s17  ;;  %v646_v8 = vpack.c.bf16 %v644_v0, %v644_v0 }
 0x125   : > { %742 = vrot.lane.b32.xlu1 %v2305_v47, %s2172_s15 }
 0x12c   : > { %927 = vrot.lane.b32.xlu2 %v922_v19, %s2175_s18  ;;  %813 = vrot.lane.b32.xlu0 %v808_v23, %s2176_s19  ;;  %v645_v19 = vpack.c.bf16 %v643_v11, %v642_v33  ;;  %v698_v23 = vmul.f32 %v2385_v45, %v2312_v52 }
 0x12d   : > { %950 = vrot.lane.b32.xlu1 %v945_v20, %s2175_s18  ;;  %v686_v20 = vunpack.c.l.bf16 %v683_v17 }
 0x12e   : > { %v701_v28 = vpack.c.bf16 %v699_v49, %v698_v23 }
 0x12f   : > { %v700_v24 = vmul.f32 %v2346_v22, %v686_v20 }
 0x131   : > { %v702_v29 = vpack.c.bf16 %v700_v24, %v700_v24 }
 0x134   : > { %865 = vrot.lane.b32.xlu2 %v861_v36, %s2174_s17  ;;  %730 = vrot.lane.b32.xlu0 %v725_v39, %s2178_s21  ;;  %v782_v36 = vmul.f32 %v2371_v40, %v2315_v53 }
 0x135   : > { %674 = vrot.lane.b32.xlu1 %v669_v37, %s2177_s20 }
 0x136   : > { %v784_v37 = vpack.c.bf16 %v782_v36, %v781_v32 }
 0x13c   : > { %811 = vrot.lane.b32.xlu2 %v807_v55, %s2176_s19  ;;  %948 = vrot.lane.b32.xlu0 %v944_v57, %s2175_s18 }
 0x13d   : > { %844 = vrot.lane.b32.xlu1 %v839_v56, %s2174_s17 }
 0x144   : > { %728 = vrot.lane.b32.xlu2 %v724_v3, %s2178_s21  ;;  %651 = vrot.lane.b32.xlu0 %v646_v8, %s2177_s20 }
 0x145   : > { %925 = vrot.lane.b32.xlu1 %v921_v5, %s2175_s18 }
 0x14c   : > { %649 = vrot.lane.b32.xlu2 %v645_v19, %s2177_s20  ;;  %672 = vrot.lane.b32.xlu0 %v668_v21, %s2177_s20 }
 0x14d   : > { %790 = vrot.lane.b32.xlu1 %v785_v18, %s2176_s19 }
 0x154   : > { %707 = vrot.lane.b32.xlu2 %v702_v29, %s2178_s21  ;;  %842 = vrot.lane.b32.xlu0 %v838_v31, %s2174_s17 }
 0x155   : > { %705 = vrot.lane.b32.xlu1 %v701_v28, %s2178_s21 }
 0x15c   : > { %788 = vrot.lane.b32.xlu0 %v784_v37, %s2176_s19 }
 0x15d   : > { %600 = vrot.lane.b32.xlu1 %v595_v38, %s2173_s16 }
 0x164   : > { %598 = vrot.lane.b32.xlu0 %v2305_v47, %s2173_s16 }
 0x166   : > { %v897_v39 = vpop.permute.xlu2 %896 }
 0x167   : > { %v899_v48 = vrot.slane %v897_v39, 4 }
 0x16c   : > { %1149 = vperm.xlu0 %2112, %v1146_v42  }
 0x16e   : > { %v617_v52 = vpop.permute.xlu2 %616 }
 0x16f   : > { %v619_v0 = vrot.slane %v617_v52, 4 }
 0x176   : > { %v745_v43 = vpop.permute.xlu2 %744 }
 0x177   : > { %v747_v17 = vrot.slane %v745_v43, 4 }
 0x17e   : > { %v880_v44 = vpop.permute.xlu2 %879 }
 0x17f   : > { %v760_v53 = vpop.permute.xlu1 %759  ;;  %v883_v47 = vrot.slane %v880_v44, 4 }
 0x180   : > { %v762_v5 = vrot.slane %v760_v53, 4 }
 0x186   : > { %v882_v51 = vpop.permute.xlu0 %881  ;;  %v2453_v55 = vpop.permute.xlu2 %927 }
 0x187   : > { %v895_v46 = vpop.permute.xlu1 %894  ;;  %v884_v57 = vrot.slane %v882_v51, 4 }
 0x188   : > { %v898_v56 = vrot.slane %v895_v46, 4 }
 0x189   : > { %v885_v60 = vsel %vm604_vm15, %v883_v47, %v884_v57 }
 0x18a   : > { %v900_v58 = vsel %vm604_vm15, %v898_v56, %v899_v48  ;;  %v887_v62 = vsel %vm886_vm0, %v880_v44, %v885_v60 }
 0x18b   : > { %v901_v61 = vsel %vm886_vm0, %v895_v46, %v900_v58  ;;  %889 = vst [vmem:[#allocation3 + $0x70] sm:$0xff] %v887_v62 }
 0x18c   : > { %903 = vst [vmem:[#allocation3 + $0x78] sm:$0xff] %v901_v61 }
 0x18e   : > { %v758_v1 = vpop.permute.xlu0 %757  ;;  %v866_v8 = vpop.permute.xlu2 %865 }
 0x18f   : > { %v615_v63 = vpop.permute.xlu1 %614  ;;  %v761_v6 = vrot.slane %v758_v1, 4  ;;  %v869_v20 = vrot.slane %v866_v8, 4 }
 0x190   : > { %v618_v3 = vrot.slane %v615_v63, 4 }
 0x191   : > { %v763_v33 = vsel %vm604_vm15, %v761_v6, %v762_v5 }
 0x192   : > { %v620_v10 = vsel %vm604_vm15, %v618_v3, %v619_v0  ;;  %v764_v15 = vsel %vm749_vm2, %v758_v1, %v763_v33  ;;  %v930_v1 = vrot.slane %v2453_v55, 4 }
 0x193   : > { %v621_v11 = vsel %vm606_vm1, %v615_v63, %v620_v10  ;;  %766 = vst [vmem:[#allocation3 + $0x48] sm:$0xff] %v764_v15 }
 0x194   : > { %623 = vst [vmem:[#allocation3 + $0x18] sm:$0xff] %v621_v11 }
 0x196   : > { %v868_v18 = vpop.permute.xlu0 %867  ;;  %v812_v27 = vpop.permute.xlu2 %811 }
 0x197   : > { %v743_v16 = vpop.permute.xlu1 %742  ;;  %v870_v21 = vrot.slane %v868_v18, 4  ;;  %v815_v31 = vrot.slane %v812_v27, 4 }
 0x198   : > { %v746_v19 = vrot.slane %v743_v16, 4 }
 0x199   : > { %v871_v49 = vsel %vm604_vm15, %v869_v20, %v870_v21  ;;  %v1957_v20 = vld [vmem:[#allocation3 + $0x78] sm:$0xf0] }
 0x19a   : > { %v748_v23 = vsel %vm604_vm15, %v746_v19, %v747_v17  ;;  %v872_v50 = vsel %vm849_vm3, %v866_v8, %v871_v49  ;;  %v2055_v17 = vld [vmem:[#allocation3 + $0x74] sm:$0xf0] }
 0x19b   : > { %v750_v24 = vsel %vm749_vm2, %v743_v16, %v748_v23  ;;  %874 = vst [vmem:[#allocation3 + $0x68] sm:$0xff] %v872_v50 }
 0x19c   : > { %752 = vst [vmem:[#allocation3 + $0x40] sm:$0xff] %v750_v24 }
 0x19e   : > { %v814_v29 = vpop.permute.xlu0 %813  ;;  %v729_v38 = vpop.permute.xlu2 %728 }
 0x19f   : > { %v951_v28 = vpop.permute.xlu1 %950  ;;  %v816_v32 = vrot.slane %v814_v29, 4  ;;  %v732_v52 = vrot.slane %v729_v38, 4 }
 0x1a0   : > { %v953_v51 = vrot.slane %v951_v28, 4 }
 0x1a1   : > { %v817_v36 = vsel %vm604_vm15, %v815_v31, %v816_v32  ;;  %v1939_v32 = vld [vmem:[#allocation3 + $0x48] sm:$0xf] }
 0x1a2   : > { %v818_v37 = vsel %vm795_vm5, %v812_v27, %v817_v36  ;;  %v1955_v6 = vld [vmem:[#allocation3 + $0x68] sm:$0xf]  ;;  %v2053_v15 = vld [vmem:[#allocation3 + $0x6c] sm:$0xf] }
 0x1a3   : > { %820 = vst [vmem:[#allocation3 + $0x58] sm:$0xff] %v818_v37  ;;  %v1956_v19 = vor.u32 %v2055_v17, %v1955_v6  ;;  %v1960_v23 = vor.u32 %v2053_v15, %v1957_v20  ;;  %v2049_v36 = vld [vmem:[#allocation3 + $0x4c] sm:$0xf]  ;;  %v1909_v15 = vld [vmem:[#allocation3 + $0x18] sm:$0xf0] }
 0x1a4   : > { %v1907_v17 = vld [vmem:[#allocation3 + $0x8] sm:$0xf] }
 0x1a6   : > { %v731_v42 = vpop.permute.xlu0 %730  ;;  %v650_v61 = vpop.permute.xlu2 %649 }
 0x1a7   : > { %v2469_v39 = vpop.permute.xlu1 %674  ;;  %v733_v43 = vrot.slane %v731_v42, 4  ;;  %v653_v8 = vrot.slane %v650_v61, 4 }
 0x1a9   : > { %v734_v44 = vsel %vm604_vm15, %v732_v52, %v733_v43 }
 0x1aa   : > { %v735_v53 = vsel %vm712_vm6, %v729_v38, %v734_v44  ;;  %v2051_v50 = vld [vmem:[#allocation3 + $0x54] sm:$0xf0]  ;;  %v1941_v27 = vld [vmem:[#allocation3 + $0x58] sm:$0xf0]  ;;  %v677_v44 = vrot.slane %v2469_v39, 4 }
 0x1ab   : > { %737 = vst [vmem:[#allocation3 + $0x38] sm:$0xff] %v735_v53  ;;  %v1940_v52 = vor.u32 %v2051_v50, %v1939_v32  ;;  %v1944_v43 = vor.u32 %v2049_v36, %v1941_v27 }
 0x1ae   : > { %v949_v48 = vpop.permute.xlu0 %948 }
 0x1af   : > { %v2473_v46 = vpop.permute.xlu1 %844  ;;  %v952_v56 = vrot.slane %v949_v48, 4 }
 0x1b0   : > { %v847_v39 = vrot.slane %v2473_v46, 4  ;;  %v2043_v46 = vld [vmem:[#allocation3 + $0x14] sm:$0xf0] }
 0x1b1   : > { %v954_v47 = vsel %vm604_vm15, %v952_v56, %v953_v51  ;;  %v708_v56 = vpop.permute.xlu2 %707  ;;  %v1908_v20 = vor.u32 %v2043_v46, %v1907_v17 }
 0x1b2   : > { %v955_v57 = vsel %vm932_vm7, %v949_v48, %v954_v47 }
 0x1b3   : > { %v1029_v58 = vunpack.c.l.b16 %v955_v57  ;;  %v1030_v60 = vunpack.c.h.b16 %v955_v57  ;;  %v710_v57 = vrot.slane %v708_v56, 4 }
 0x1b5   : > { %v1049_v63 = vpack.c.b16 %v1029_v58, %v1029_v58  ;;  %v1050_v0 = vpack.c.b16 %v1030_v60, %v1030_v60 }
 0x1b6   : > { %v652_v3 = vpop.permute.xlu0 %651 }
 0x1b7   : > { %v926_v62 = vpop.permute.xlu1 %925  ;;  %v654_v10 = vrot.slane %v652_v3, 4  ;;  %v1079_v33 = vsel %vm604_vm15, %v1049_v63, 0  ;;  %v1082_v11 = vsel %vm604_vm15, %v1050_v0, 0  ;;  %v1136_v63 = vld [vmem:[%s455_s28] sm:$0xff]  ;;  %v2047_v3 = vld [vmem:[#allocation3 + $0x34] sm:$0xf0] }
 0x1b8   : > { %v929_v5 = vrot.slane %v926_v62, 4  ;;  %1113 = vmatpush.bf16.msra.mxu2 %v1079_v33  ;;  %1126 = vmatpush.bf16.msra.mxu3 %v1082_v11 }
 0x1b9   : > { %v655_v18 = vsel %vm604_vm15, %v653_v8, %v654_v10  ;;  %1139 = vperm.xlu2 %2138, %v1136_v63   ;;  %v1899_v63 = vld [vmem:[#allocation3] sm:$0xf] }
 0x1ba   : > { %v931_v16 = vsel %vm604_vm15, %v929_v5, %v930_v1  ;;  %v657_v21 = vsel %vm656_vm10, %v650_v61, %v655_v18  ;;  %v1925_v5 = vld [vmem:[#allocation3 + $0x38] sm:$0xf0]  ;;  %v2041_v18 = vld [vmem:[#allocation3 + $0xc] sm:$0xf] }
 0x1bb   : > { %v933_v55 = vsel %vm932_vm7, %v926_v62, %v931_v16  ;;  %659 = vst [vmem:[#allocation3 + $0x20] sm:$0xff] %v657_v21  ;;  %v1912_v21 = vor.u32 %v2041_v18, %v1909_v15 }
 0x1bc   : > { %v1027_v49 = vunpack.c.l.b16 %v933_v55  ;;  %v1028_v24 = vunpack.c.h.b16 %v933_v55  ;;  %1114 = vmatpush.bf16.msra.mxu2 %v1956_v19  ;;  %1127 = vmatpush.bf16.msra.mxu3 %v1960_v23 }
 0x1be   : > { %v1047_v28 = vpack.c.b16 %v1027_v49, %v1027_v49  ;;  %v1048_v29 = vpack.c.b16 %v1028_v24, %v1028_v24  ;;  %v673_v37 = vpop.permute.xlu0 %672  ;;  %v958_v49 = vld [vmem:[%s2713_s7] sm:$0xf]  ;;  %v2054_v24 = vld [vmem:[#allocation3 + $0x6c] sm:$0xf0] }
 0x1bf   : > { %v791_v31 = vpop.permute.xlu1 %790  ;;  %v676_v53 = vrot.slane %v673_v37, 4 }
 0x1c0   : > { %v1073_v38 = vsel %vm604_vm15, %v1047_v28, 0  ;;  %v1076_v42 = vsel %vm604_vm15, %v1048_v29, 0  ;;  %1115 = vmatpush.bf16.msra.mxu2 %v1940_v52  ;;  %1128 = vmatpush.bf16.msra.mxu3 %v1944_v43  ;;  %v793_v55 = vrot.slane %v791_v31, 4  ;;  %v1949_v29 = vld [vmem:[#allocation3 + $0x70] sm:$0xf0] }
 0x1c1   : > { %1087 = vmatpush.bf16.msra.mxu0 %v1073_v38  ;;  %1100 = vmatpush.bf16.msra.mxu1 %v1076_v42  ;;  %v678_v48 = vsel %vm604_vm15, %v676_v53, %v677_v44  ;;  %v1931_v43 = vld [vmem:[#allocation3 + $0x40] sm:$0xf] }
 0x1c2   : > { %v679_v51 = vsel %vm656_vm10, %v673_v37, %v678_v48  ;;  %v2048_v48 = vld [vmem:[#allocation3 + $0x44] sm:$0xf] }
 0x1c3   : > { %681 = vst [vmem:[#allocation3 + $0x28] sm:$0xff] %v679_v51 }
 0x1c6   : > { %v843_v58 = vpop.permute.xlu0 %842 }
 0x1c7   : > { %v706_v47 = vpop.permute.xlu1 %705  ;;  %v846_v61 = vrot.slane %v843_v58, 4 }
 0x1c8   : > { %v709_v60 = vrot.slane %v706_v47, 4 }
 0x1c9   : > { %v848_v0 = vsel %vm604_vm15, %v846_v61, %v847_v39  ;;  %v2044_v39 = vld [vmem:[#allocation3 + $0x24] sm:$0xf] }
 0x1ca   : > { %v711_v62 = vsel %vm604_vm15, %v709_v60, %v710_v57  ;;  %v850_v6 = vsel %vm849_vm3, %v843_v58, %v848_v0  ;;  %v1923_v8 = vld [vmem:[#allocation3 + $0x28] sm:$0xf]  ;;  %v2045_v10 = vld [vmem:[#allocation3 + $0x2c] sm:$0xf]  ;;  %v1915_v60 = vld [vmem:[#allocation3 + $0x20] sm:$0xf] }
 0x1cb   : > { %v713_v1 = vsel %vm712_vm6, %v706_v47, %v711_v62  ;;  %852 = vst [vmem:[#allocation3 + $0x60] sm:$0xff] %v850_v6  ;;  %v1924_v33 = vor.u32 %v2047_v3, %v1923_v8  ;;  %v1928_v11 = vor.u32 %v2045_v10, %v1925_v5 }
 0x1cc   : > { %715 = vst [vmem:[#allocation3 + $0x30] sm:$0xff] %v713_v1  ;;  %v2040_v1 = vld [vmem:[#allocation3 + $0x4] sm:$0xf] }
 0x1cd   : > { %1116 = vmatpush.bf16.msra.mxu2 %v1924_v33  ;;  %1129 = vmatpush.bf16.msra.mxu3 %v1928_v11 }
 0x1ce   : > { %v789_v16 = vpop.permute.xlu0 %788 }
 0x1cf   : > { %v792_v19 = vrot.slane %v789_v16, 4  ;;  %v601_v36 = vpop.permute.xlu1 %600 }
 0x1d0   : > { %v603_v38 = vrot.slane %v601_v36, 4 }
 0x1d1   : > { %v794_v23 = vsel %vm604_vm15, %v792_v19, %v793_v55  ;;  %1117 = vmatpush.bf16.msra.mxu2 %v1908_v20  ;;  %1130 = vmatpush.bf16.msra.mxu3 %v1912_v21 }
 0x1d2   : > { %v796_v50 = vsel %vm795_vm5, %v789_v16, %v794_v23  ;;  %v1947_v27 = vld [vmem:[#allocation3 + $0x60] sm:$0xf]  ;;  %v2052_v28 = vld [vmem:[#allocation3 + $0x64] sm:$0xf] }
 0x1d3   : > { %798 = vst [vmem:[#allocation3 + $0x50] sm:$0xff] %v796_v50  ;;  %v1948_v31 = vor.u32 %v2054_v24, %v1947_v27  ;;  %v1952_v32 = vor.u32 %v2052_v28, %v1949_v29  ;;  %v2046_v57 = vld [vmem:[#allocation3 + $0x2c] sm:$0xf0]  ;;  %v1917_v58 = vld [vmem:[#allocation3 + $0x30] sm:$0xf0] }
 0x1d4   : > { %1963 = vmatmul.msk.bf16.vlgmr.msra.gmra.mxu2 %vm1067_vm11, %v958_v49  ;;  %1964 = vmatmul.msk.bf16.vlgmr.msra.gmra.mxu3 %vm1067_vm11, %v958_v49  ;;  %v1916_v61 = vor.u32 %v2046_v57, %v1915_v60  ;;  %v1920_v62 = vor.u32 %v2044_v39, %v1917_v58 }
 0x1d5   : > { %1088 = vmatpush.bf16.msra.mxu0 %v1948_v31  ;;  %1101 = vmatpush.bf16.msra.mxu1 %v1952_v32 }
 0x1d6   : > { %v599_v37 = vpop.permute.xlu0 %598 }
 0x1d7   : > { %v602_v42 = vrot.slane %v599_v37, 4 }
 0x1d9   : > { %v605_v52 = vsel %vm604_vm15, %v602_v42, %v603_v38 }
 0x1da   : > { %v607_v44 = vsel %vm606_vm1, %v599_v37, %v605_v52  ;;  %v2050_v53 = vld [vmem:[#allocation3 + $0x4c] sm:$0xf0]  ;;  %v1933_v51 = vld [vmem:[#allocation3 + $0x50] sm:$0xf0] }
 0x1db   : > { %609 = vst [vmem:[#allocation3 + $0x10] sm:$0xff] %v607_v44  ;;  %v1932_v56 = vor.u32 %v2050_v53, %v1931_v43  ;;  %v1936_v47 = vor.u32 %v2048_v48, %v1933_v51 }
 0x1dd   : > { %1089 = vmatpush.bf16.msra.mxu0 %v1932_v56  ;;  %1102 = vmatpush.bf16.msra.mxu1 %v1936_v47 }
 0x1de   : > { %v1150_v15 = vpop.permute.xlu0 %1149 }
 0x1e1   : > { %1090 = vmatpush.bf16.msra.mxu0 %v1916_v61  ;;  %1103 = vmatpush.bf16.msra.mxu1 %v1920_v62 }
 0x1e2   : > { %v2042_v0 = vld [vmem:[#allocation3 + $0xc] sm:$0xf0]  ;;  %v1901_v3 = vld [vmem:[#allocation3 + $0x10] sm:$0xf0] }
 0x1e3   : > { %v1900_v5 = vor.u32 %v2042_v0, %v1899_v63  ;;  %v1904_v6 = vor.u32 %v2040_v1, %v1901_v3 }
 0x1e5   : > { %1091 = vmatpush.bf16.msra.mxu0 %v1900_v5  ;;  %1104 = vmatpush.bf16.msra.mxu1 %v1904_v6 }
 0x1e8   : > { %1961 = vmatmul.msk.bf16.vlgmr.msra.gmra.mxu0 %vm1067_vm11, %v958_v49  ;;  %1962 = vmatmul.msk.bf16.vlgmr.msra.gmra.mxu1 %vm1067_vm11, %v958_v49 }
 0x213   : > { %v1140_v8 = vpop.permute.xlu2 %1139 }
 0x257   : > { %v1119_v10 = vpop.f32.mrf.mxu2  ;;  %v1132_v33 = vpop.f32.mrf.mxu3 }
 0x258   : > { %v1144_v11 = vmul.f32 %v1140_v8, %v1119_v10  ;;  %v1145_v46 = vmul.f32 %v1140_v8, %v1132_v33 }
 0x25a   : > { %v1154_v16 = vadd.f32 %v1150_v15, %v1144_v11  ;;  %v1155_v17 = vadd.f32 %v1150_v15, %v1145_v46 }
 0x25c   : > { %v1158_v18 = vmax.f32 %v1154_v16, 0.0  ;;  %v1159_v55 = vmax.f32 %v1155_v17, 0.0 }
 0x25e   : > { %v1161_v19 = vpack.c.bf16 %v1159_v55, %v1158_v18 }
 0x25f   : > { %v1121_v20 = vpop.f32.mrf.mxu2  ;;  %v1134_v21 = vpop.f32.mrf.mxu3 }
 0x260   : > { %1172 = vrot.lane.b32.xlu1 %v1161_v19, %s2170_s29 }
 0x265   : > { %v1093_v23 = vpop.f32.mrf.mxu0  ;;  %v1106_v24 = vpop.f32.mrf.mxu1 }
 0x266   : > { %v1142_v50 = vmul.f32 %v1140_v8, %v1093_v23  ;;  %v1143_v27 = vmul.f32 %v1140_v8, %v1106_v24 }
 0x268   : > { %v1152_v49 = vadd.f32 %v1150_v15, %v1142_v50  ;;  %v1153_v28 = vadd.f32 %v1150_v15, %v1143_v27 }
 0x26a   : > { %v1156_v29 = vmax.f32 %v1152_v49, 0.0  ;;  %v1157_v31 = vmax.f32 %v1153_v28, 0.0 }
 0x26c   : > { %v1160_v32 = vpack.c.bf16 %v1157_v31, %v1156_v29 }
 0x26d   : > { %v1095_v36 = vpop.f32.mrf.mxu0  ;;  %v1108_v37 = vpop.f32.mrf.mxu1 }
 0x26e   : > { %1163 = vrot.lane.b32.xlu2 %v1160_v32, %s2170_s29 }
 0x2c8   : > { %v1164_v38 = vpop.permute.xlu2 %1163 }
 0x2c9   : > { %v1165_v42 = vrot.slane %v1164_v38, 4 }
 0x2cb   : > { %v1166_v52 = vsel %vm551_vm8, %v1165_v42, %v1164_v38  ;;  %1170 = vst.msk [vmem:[#allocation2 + $0x8] sm:$0xf] %vm521_vm4, %v1165_v42 }
 0x2cc   : > { %1169 = vst.msk [vmem:[#allocation2] sm:$0xff] %vm2286_vm9, %v1166_v52 }
 0x2d2   : > { %v1173_v43 = vpop.permute.xlu1 %1172  ;;  %v1427_v44 = vld [vmem:[#allocation2 + $0x8] sm:$0xf] }
 0x2d3   : > { %v1174_v53 = vrot.slane %v1173_v43, 4  ;;  %1432 = vrot.lane.b32.xlu0 %v1427_v44, %s2171_s14  ;;  %v2516_v48 = vld [vmem:[#allocation2] sm:$0xff]  ;;  %v1455_v56 = vld [vmem:[#allocation2 + $0x8] sm:$0xf] }
 0x2d4   : > { %1430 = vrot.lane.b32.xlu2 %v2516_v48, %s2171_s14  ;;  %v2525_v47 = vunpack.c.l.bf16 %v2516_v48  ;;  %v2528_v57 = vunpack.c.h.bf16 %v2516_v48  ;;  %v1339_v58 = vld [vmem:[#allocation2 + $0x8] sm:$0xf]  ;;  %v1458_v39 = vunpack.c.l.bf16 %v1455_v56 }
 0x2d5   : > { %v1175_v51 = vsel %vm551_vm8, %v1174_v53, %v1173_v43  ;;  %1179 = vst.msk [vmem:[#allocation2 + $0x14] sm:$0xf] %vm521_vm4, %v1174_v53  ;;  %v1383_v60 = vld [vmem:[#allocation2 + $0x8] sm:$0xf]  ;;  %v1342_v62 = vunpack.c.l.bf16 %v1339_v58 }
 0x2d6   : > { %1178 = vst.msk [vmem:[#allocation2 + $0xc] sm:$0xff] %vm2286_vm9, %v1175_v51  ;;  %v1311_v61 = vld [vmem:[#allocation2 + $0x8] sm:$0xf]  ;;  %v2532_v63 = vmul.f32 %v2385_v45, %v2525_v47  ;;  %v2536_v35 = vmul.f32 %v2528_v57, %v2393_v59  ;;  %v1386_v0 = vunpack.c.l.bf16 %v1383_v60  ;;  %v1183_v1 = vmul.f32 %v2262_v12, %v2525_v47 }
 0x2d7   : > { %v1184_v3 = vmul.f32 %v2264_v13, %v2528_v57  ;;  %v1461_v8 = vmul.f32 %v2332_v4, %v1458_v39  ;;  %v1345_v33 = vmul.f32 %v2334_v7, %v1342_v62  ;;  %v1459_v21 = vmul.f32 %v2367_v34, %v2525_v47 }
 0x2d8   : > { %v1274_v6 = vpack.c.bf16 %v2536_v35, %v2532_v63  ;;  %v1389_v46 = vmul.f32 %v2317_v54, %v1386_v0  ;;  %v1460_v23 = vmul.f32 %v2528_v57, %v2377_v41  ;;  %v1343_v24 = vmul.f32 %v2363_v30, %v2525_v47 }
 0x2d9   : > { %v1185_v10 = vpack.c.bf16 %v1184_v3, %v1183_v1  ;;  %v1463_v15 = vpack.c.bf16 %v1461_v8, %v1461_v8  ;;  %v1347_v18 = vpack.c.bf16 %v1345_v33, %v1345_v33  ;;  %v1344_v50 = vmul.f32 %v2528_v57, %v2371_v40 }
 0x2da   : > { %v1391_v55 = vpack.c.bf16 %v1389_v46, %v1389_v46  ;;  %v1387_v52 = vmul.f32 %v2343_v14, %v2525_v47  ;;  %v1388_v43 = vmul.f32 %v2528_v57, %v2350_v25 }
 0x2db   : > { %1316 = vrot.lane.b32.xlu0 %v1311_v61, %s2172_s15  ;;  %1186 = vst [vmem:[#allocation3] sm:$0xff] %v1185_v10 }
 0x2dc   : > { %1314 = vrot.lane.b32.xlu2 %v2516_v48, %s2172_s15  ;;  %v1441_v5 = vld [vmem:[#allocation2 + $0x14] sm:$0xf]  ;;  %v1390_v51 = vpack.c.bf16 %v1388_v43, %v1387_v52 }
 0x2dd   : > { %1446 = vrot.lane.b32.xlu1 %v1441_v5, %s2171_s14  ;;  %v2550_v11 = vld [vmem:[#allocation2 + $0xc] sm:$0xff]  ;;  %v1477_v49 = vld [vmem:[#allocation2 + $0x14] sm:$0xf] }
 0x2de   : > { %v2554_v16 = vunpack.c.l.bf16 %v2550_v11  ;;  %v2557_v17 = vunpack.c.h.bf16 %v2550_v11  ;;  %v1325_v28 = vld [vmem:[#allocation2 + $0x14] sm:$0xf]  ;;  %v1480_v29 = vunpack.c.l.bf16 %v1477_v49 }
 0x2df   : > { %v1405_v32 = vld [vmem:[#allocation2 + $0x14] sm:$0xf] }
 0x2e0   : > { %v1190_v19 = vmul.f32 %v2262_v12, %v2554_v16  ;;  %v1191_v20 = vmul.f32 %v2264_v13, %v2557_v17  ;;  %v1462_v12 = vpack.c.bf16 %v1460_v23, %v1459_v21  ;;  %v1346_v13 = vpack.c.bf16 %v1344_v50, %v1343_v24  ;;  %v1289_v36 = vld [vmem:[#allocation2 + $0x14] sm:$0xf] }
 0x2e1   : > { %v1483_v31 = vmul.f32 %v2332_v4, %v1480_v29  ;;  %v1408_v37 = vunpack.c.l.bf16 %v1405_v32  ;;  %v1292_v42 = vunpack.c.l.bf16 %v1289_v36  ;;  %v1361_v53 = vld [vmem:[#allocation2 + $0x14] sm:$0xf]  ;;  %v1481_v39 = vmul.f32 %v2367_v34, %v2554_v16 }
 0x2e2   : > { %v1192_v27 = vpack.c.bf16 %v1191_v20, %v1190_v19  ;;  %v1364_v58 = vunpack.c.l.bf16 %v1361_v53  ;;  %v1482_v61 = vmul.f32 %v2557_v17, %v2377_v41  ;;  %v1245_v62 = vld [vmem:[#allocation2 + $0x14] sm:$0xf]  ;;  %v1409_v34 = vmul.f32 %v2343_v14, %v2554_v16 }
 0x2e3   : > { %1468 = vrot.lane.b32.xlu0 %v1463_v15, %s2175_s18  ;;  %v1485_v38 = vpack.c.bf16 %v1483_v31, %v1483_v31  ;;  %v1411_v4 = vmul.f32 %v2317_v54, %v1408_v37  ;;  %v1295_v44 = vmul.f32 %v2346_v22, %v1292_v42  ;;  %v1248_v3 = vunpack.c.l.bf16 %v1245_v62  ;;  %v1209_v5 = vld [vmem:[#allocation2 + $0x14] sm:$0xf]  ;;  %v1223_v15 = vld [vmem:[#allocation2 + $0x8] sm:$0xf] }
 0x2e4   : > { %1352 = vrot.lane.b32.xlu2 %v1347_v18, %s2176_s19  ;;  %1193 = vst [vmem:[#allocation3 + $0x8] sm:$0xff] %v1192_v27  ;;  %v1367_v54 = vmul.f32 %v2334_v7, %v1364_v58  ;;  %v1484_v0 = vpack.c.bf16 %v1482_v61, %v1481_v39  ;;  %v1410_v41 = vmul.f32 %v2557_v17, %v2350_v25  ;;  %v1226_v20 = vunpack.c.l.bf16 %v1223_v15 }
 0x2e5   : > { %1396 = vrot.lane.b32.xlu1 %v1391_v55, %s2174_s17  ;;  %v1413_v56 = vpack.c.bf16 %v1411_v4, %v1411_v4  ;;  %v1297_v60 = vpack.c.bf16 %v1295_v44, %v1295_v44  ;;  %v1251_v8 = vmul.f32 %v2353_v26, %v1248_v3  ;;  %v1293_v33 = vmul.f32 %v2385_v45, %v2554_v16  ;;  %v1267_v55 = vld [vmem:[#allocation2 + $0x8] sm:$0xf] }
 0x2e6   : > { %v1369_v1 = vpack.c.bf16 %v1367_v54, %v1367_v54  ;;  %v1412_v10 = vpack.c.bf16 %v1410_v41, %v1409_v34  ;;  %v1294_v46 = vmul.f32 %v2557_v17, %v2393_v59  ;;  %v1227_v14 = vmul.f32 %v2408_v2, %v2525_v47 }
 0x2e7   : > { %v1253_v7 = vpack.c.bf16 %v1251_v8, %v1251_v8  ;;  %v1228_v25 = vmul.f32 %v2528_v57, %v2415_v9  ;;  %v1366_v18 = vmul.f32 %v2557_v17, %v2371_v40  ;;  %v1270_v21 = vunpack.c.l.bf16 %v1267_v55 }
 0x2e8   : > { %v1296_v19 = vpack.c.bf16 %v1294_v46, %v1293_v33  ;;  %v1229_v47 = vmul.f32 %v2353_v26, %v1226_v20  ;;  %v1249_v40 = vmul.f32 %v2408_v2, %v2554_v16  ;;  %v1250_v57 = vmul.f32 %v2557_v17, %v2415_v9  ;;  %v1195_v2 = vld [vmem:[#allocation2 + $0x8] sm:$0xf] }
 0x2e9   : > { %v1230_v45 = vpack.c.bf16 %v1228_v25, %v1227_v14 }
 0x2ea   : > { %v1231_v23 = vpack.c.bf16 %v1229_v47, %v1229_v47  ;;  %v1252_v50 = vpack.c.bf16 %v1250_v57, %v1249_v40 }
 0x2eb   : > { %1330 = vrot.lane.b32.xlu0 %v1325_v28, %s2172_s15 }
 0x2ec   : > { %1466 = vrot.lane.b32.xlu2 %v1462_v12, %s2175_s18 }
 0x2ed   : > { %1350 = vrot.lane.b32.xlu1 %v1346_v13, %s2176_s19 }
 0x2f3   : > { %1444 = vrot.lane.b32.xlu0 %v2550_v11, %s2171_s14 }
 0x2f4   : > { %1328 = vrot.lane.b32.xlu2 %v2550_v11, %s2172_s15  ;;  %s463_s15 = scalar_lea.vmem %s2711_s5, %s2252_s13 }
 0x2f5   : > { %1490 = vrot.lane.b32.xlu1 %v1485_v38, %s2175_s18 }
 0x2fb   : > { %1394 = vrot.lane.b32.xlu0 %v1390_v51, %s2174_s17 }
 0x2fc   : > { %1418 = vrot.lane.b32.xlu2 %v1413_v56, %s2174_s17 }
 0x2fd   : > { %1302 = vrot.lane.b32.xlu1 %v1297_v60, %s2178_s21 }
 0x303   : > { %1488 = vrot.lane.b32.xlu0 %v1484_v0, %s2175_s18 }
 0x304   : > { %1374 = vrot.lane.b32.xlu2 %v1369_v1, %s2176_s19 }
 0x305   : > { %1214 = vrot.lane.b32.xlu1 %v1209_v5, %s2173_s16 }
 0x30b   : > { %1212 = vrot.lane.b32.xlu0 %v2550_v11, %s2173_s16  ;;  %v1365_v11 = vmul.f32 %v2363_v30, %v2554_v16  ;;  %v1273_v30 = vmul.f32 %v2346_v22, %v1270_v21  ;;  %v1674_v22 = vld [vmem:[%s463_s15] sm:$0xff] }
 0x30c   : > { %1258 = vrot.lane.b32.xlu2 %v1253_v7, %s2177_s20 }
 0x30d   : > { %1416 = vrot.lane.b32.xlu1 %v1412_v10, %s2174_s17  ;;  %v1368_v59 = vpack.c.bf16 %v1366_v18, %v1365_v11  ;;  %v1275_v24 = vpack.c.bf16 %v1273_v30, %v1273_v30 }
 0x313   : > { %1300 = vrot.lane.b32.xlu0 %v1296_v19, %s2178_s21 }
 0x314   : > { %1234 = vrot.lane.b32.xlu2 %v1230_v45, %s2177_s20 }
 0x315   : > { %1372 = vrot.lane.b32.xlu1 %v1368_v59, %s2176_s19  ;;  %s467_s19 = scalar_lea.vmem %s2712_s6, %s2252_s13 }
 0x316   : > { %v1684_v26 = vld [vmem:[%s467_s19] sm:$0xff] }
 0x31b   : > { %1236 = vrot.lane.b32.xlu0 %v1231_v23, %s2177_s20 }
 0x31c   : > { %1280 = vrot.lane.b32.xlu2 %v1275_v24, %s2178_s21 }
 0x31d   : > { %1256 = vrot.lane.b32.xlu1 %v1252_v50, %s2177_s20  ;;  %s2039_s20 = sshll.u32 %s2723_s30, 5 }
 0x31e   : > { %s477_s25 = scalar_lea.vmem %s2715_s9, %s2039_s20 }
 0x323   : > { %1198 = vrot.lane.b32.xlu0 %v2516_v48, %s2173_s16 }
 0x324   : > { %1677 = vperm.xlu2 %2138, %v1674_v22  }
 0x325   : > { %1278 = vrot.lane.b32.xlu1 %v1274_v6, %s2178_s21 }
 0x32b   : > { %1687 = vperm.xlu0 %2112, %v1684_v26  }
 0x32d   : > { %1200 = vrot.lane.b32.xlu1 %v1195_v2, %s2173_s16 }
 0x32e   : > { %v1431_v9 = vpop.permute.xlu2 %1430 }
 0x32f   : > { %v1434_v27 = vrot.slane %v1431_v9, 4 }
 0x336   : > { %v1315_v16 = vpop.permute.xlu2 %1314 }
 0x337   : > { %v1318_v6 = vrot.slane %v1315_v16, 4 }
 0x33e   : > { %v1353_v49 = vpop.permute.xlu2 %1352 }
 0x33f   : > { %v1355_v0 = vrot.slane %v1353_v49, 4 }
 0x345   : > { %v1433_v17 = vpop.permute.xlu0 %1432 }
 0x346   : > { %v1435_v48 = vrot.slane %v1433_v17, 4  ;;  %v1467_v31 = vpop.permute.xlu2 %1466 }
 0x347   : > { %v1470_v37 = vrot.slane %v1467_v31, 4 }
 0x348   : > { %v1436_v28 = vsel %vm604_vm15, %v1434_v27, %v1435_v48 }
 0x349   : > { %v1437_v63 = vsel %vm886_vm0, %v1431_v9, %v1436_v28 }
 0x34a   : > { %1439 = vst [vmem:[#allocation3 + $0x70] sm:$0xff] %v1437_v63 }
 0x34d   : > { %v1317_v35 = vpop.permute.xlu0 %1316 }
 0x34e   : > { %v1319_v12 = vrot.slane %v1317_v35, 4  ;;  %v1329_v53 = vpop.permute.xlu2 %1328 }
 0x34f   : > { %v1447_v13 = vpop.permute.xlu1 %1446  ;;  %v1332_v60 = vrot.slane %v1329_v53, 4 }
 0x350   : > { %v1320_v29 = vsel %vm604_vm15, %v1318_v6, %v1319_v12  ;;  %v1449_v7 = vrot.slane %v1447_v13, 4 }
 0x351   : > { %v1321_v32 = vsel %vm749_vm2, %v1315_v16, %v1320_v29  ;;  %v2070_v57 = vld [vmem:[#allocation3 + $0x6c] sm:$0xf0]  ;;  %v2017_v22 = vld [vmem:[#allocation3 + $0x70] sm:$0xf0] }
 0x352   : > { %1323 = vst [vmem:[#allocation3 + $0x40] sm:$0xff] %v1321_v32 }
 0x355   : > { %v1469_v36 = vpop.permute.xlu0 %1468 }
 0x356   : > { %v1471_v38 = vrot.slane %v1469_v36, 4  ;;  %v1419_v25 = vpop.permute.xlu2 %1418 }
 0x357   : > { %v1397_v42 = vpop.permute.xlu1 %1396 }
 0x358   : > { %v1472_v52 = vsel %vm604_vm15, %v1470_v37, %v1471_v38  ;;  %v1399_v11 = vrot.slane %v1397_v42, 4  ;;  %v1421_v37 = vrot.slane %v1419_v25, 4 }
 0x359   : > { %v1473_v43 = vsel %vm932_vm7, %v1467_v31, %v1472_v52  ;;  %v1999_v48 = vld [vmem:[#allocation3 + $0x40] sm:$0xf]  ;;  %v2064_v49 = vld [vmem:[#allocation3 + $0x44] sm:$0xf] }
 0x35a   : > { %v1567_v4 = vunpack.c.l.b16 %v1473_v43  ;;  %v1568_v44 = vunpack.c.h.b16 %v1473_v43 }
 0x35c   : > { %v1587_v51 = vpack.c.b16 %v1567_v4, %v1567_v4  ;;  %v1588_v56 = vpack.c.b16 %v1568_v44, %v1568_v44 }
 0x35d   : > { %v1331_v58 = vpop.permute.xlu0 %1330 }
 0x35e   : > { %v1333_v39 = vrot.slane %v1331_v58, 4  ;;  %v1611_v61 = vsel %vm604_vm15, %v1587_v51, 0  ;;  %v1614_v54 = vsel %vm604_vm15, %v1588_v56, 0  ;;  %v1375_v47 = vpop.permute.xlu2 %1374 }
 0x35f   : > { %v1351_v62 = vpop.permute.xlu1 %1350  ;;  %1625 = vmatpush.bf16.msrb.mxu0 %v1611_v61  ;;  %1638 = vmatpush.bf16.msrb.mxu1 %v1614_v54 }
 0x360   : > { %v1334_v1 = vsel %vm604_vm15, %v1332_v60, %v1333_v39  ;;  %v1354_v3 = vrot.slane %v1351_v62, 4  ;;  %v1377_v60 = vrot.slane %v1375_v47, 4 }
 0x361   : > { %v1335_v5 = vsel %vm749_vm2, %v1329_v53, %v1334_v1 }
 0x362   : > { %1337 = vst [vmem:[#allocation3 + $0x48] sm:$0xff] %v1335_v5  ;;  %v1356_v8 = vsel %vm604_vm15, %v1354_v3, %v1355_v0 }
 0x363   : > { %v1357_v34 = vsel %vm795_vm5, %v1351_v62, %v1356_v8 }
 0x364   : > { %1359 = vst [vmem:[#allocation3 + $0x50] sm:$0xff] %v1357_v34 }
 0x365   : > { %v1445_v41 = vpop.permute.xlu0 %1444 }
 0x366   : > { %v1448_v10 = vrot.slane %v1445_v41, 4  ;;  %v1259_v52 = vpop.permute.xlu2 %1258 }
 0x367   : > { %v1491_v33 = vpop.permute.xlu1 %1490  ;;  %v1261_v25 = vrot.slane %v1259_v52, 4 }
 0x368   : > { %v1450_v46 = vsel %vm604_vm15, %v1448_v10, %v1449_v7  ;;  %v1493_v21 = vrot.slane %v1491_v33, 4 }
 0x369   : > { %v1451_v14 = vsel %vm886_vm0, %v1445_v41, %v1450_v46 }
 0x36a   : > { %1453 = vst [vmem:[#allocation3 + $0x78] sm:$0xff] %v1451_v14 }
 0x36b   : > { %v2066_v9 = vld [vmem:[#allocation3 + $0x4c] sm:$0xf0]  ;;  %v2001_v16 = vld [vmem:[#allocation3 + $0x50] sm:$0xf0] }
 0x36c   : > { %v2000_v6 = vor.u32 %v2066_v9, %v1999_v48  ;;  %v2004_v12 = vor.u32 %v2064_v49, %v2001_v16 }
 0x36d   : > { %v1395_v15 = vpop.permute.xlu0 %1394 }
 0x36e   : > { %v1398_v18 = vrot.slane %v1395_v15, 4  ;;  %v1235_v1 = vpop.permute.xlu2 %1234 }
 0x36f   : > { %v1303_v55 = vpop.permute.xlu1 %1302  ;;  %v1238_v33 = vrot.slane %v1235_v1, 4 }
 0x370   : > { %v1400_v19 = vsel %vm604_vm15, %v1398_v18, %v1399_v11  ;;  %v1305_v51 = vrot.slane %v1303_v55, 4 }
 0x371   : > { %v1401_v20 = vsel %vm849_vm3, %v1395_v15, %v1400_v19  ;;  %v2071_v0 = vld [vmem:[#allocation3 + $0x74] sm:$0xf0]  ;;  %v2025_v34 = vld [vmem:[#allocation3 + $0x78] sm:$0xf0]  ;;  %v2007_v19 = vld [vmem:[#allocation3 + $0x48] sm:$0xf] }
 0x372   : > { %1403 = vst [vmem:[#allocation3 + $0x60] sm:$0xff] %v1401_v20 }
 0x375   : > { %v1489_v45 = vpop.permute.xlu0 %1488 }
 0x376   : > { %v1492_v59 = vrot.slane %v1489_v45, 4 }
 0x377   : > { %v1215_v30 = vpop.permute.xlu1 %1214 }
 0x378   : > { %v1494_v40 = vsel %vm604_vm15, %v1492_v59, %v1493_v21  ;;  %v1217_v13 = vrot.slane %v1215_v30, 4  ;;  %v2065_v21 = vld [vmem:[#allocation3 + $0x4c] sm:$0xf] }
 0x379   : > { %v1495_v23 = vsel %vm932_vm7, %v1489_v45, %v1494_v40  ;;  %v2015_v24 = vld [vmem:[#allocation3 + $0x60] sm:$0xf]  ;;  %v2068_v50 = vld [vmem:[#allocation3 + $0x64] sm:$0xf]  ;;  %v1281_v40 = vpop.permute.xlu2 %1280 }
 0x37a   : > { %v2016_v26 = vor.u32 %v2070_v57, %v2015_v24  ;;  %v2020_v2 = vor.u32 %v2068_v50, %v2017_v22  ;;  %v1569_v17 = vunpack.c.l.b16 %v1495_v23  ;;  %v1570_v27 = vunpack.c.h.b16 %v1495_v23 }
 0x37b   : > { %v1283_v23 = vrot.slane %v1281_v40, 4 }
 0x37c   : > { %1626 = vmatpush.bf16.msrb.mxu0 %v2016_v26  ;;  %1639 = vmatpush.bf16.msrb.mxu1 %v2020_v2  ;;  %v1589_v28 = vpack.c.b16 %v1569_v17, %v1569_v17  ;;  %v1590_v63 = vpack.c.b16 %v1570_v27, %v1570_v27 }
 0x37d   : > { %v1213_v35 = vpop.permute.xlu0 %1212 }
 0x37e   : > { %v1216_v29 = vrot.slane %v1213_v35, 4  ;;  %v1617_v31 = vsel %vm604_vm15, %v1589_v28, 0  ;;  %v1620_v32 = vsel %vm604_vm15, %v1590_v63, 0 }
 0x37f   : > { %v1417_v36 = vpop.permute.xlu1 %1416  ;;  %1651 = vmatpush.bf16.msrb.mxu2 %v1617_v31  ;;  %1664 = vmatpush.bf16.msrb.mxu3 %v1620_v32 }
 0x380   : > { %v1218_v38 = vsel %vm604_vm15, %v1216_v29, %v1217_v13  ;;  %v1420_v42 = vrot.slane %v1417_v36, 4  ;;  %1627 = vmatpush.bf16.msrb.mxu0 %v2000_v6  ;;  %1640 = vmatpush.bf16.msrb.mxu1 %v2004_v12  ;;  %v2057_v6 = vld [vmem:[#allocation3 + $0xc] sm:$0xf] }
 0x381   : > { %v1219_v43 = vsel %vm606_vm1, %v1213_v35, %v1218_v38  ;;  %v1975_v35 = vld [vmem:[#allocation3 + $0x8] sm:$0xf] }
 0x382   : > { %1221 = vst [vmem:[#allocation3 + $0x18] sm:$0xff] %v1219_v43  ;;  %v1422_v4 = vsel %vm604_vm15, %v1420_v42, %v1421_v37 }
 0x383   : > { %v1423_v44 = vsel %vm849_vm3, %v1417_v36, %v1422_v4  ;;  %v1498_v36 = vld [vmem:[%s2714_s8] sm:$0xf] }
 0x384   : > { %1425 = vst [vmem:[#allocation3 + $0x68] sm:$0xff] %v1423_v44 }
 0x385   : > { %v1301_v53 = vpop.permute.xlu0 %1300 }
 0x386   : > { %v1304_v56 = vrot.slane %v1301_v53, 4 }
 0x387   : > { %v1373_v58 = vpop.permute.xlu1 %1372 }
 0x388   : > { %v1306_v39 = vsel %vm604_vm15, %v1304_v56, %v1305_v51  ;;  %v1376_v61 = vrot.slane %v1373_v58, 4  ;;  %v2056_v56 = vld [vmem:[#allocation3 + $0x4] sm:$0xf] }
 0x389   : > { %v1307_v54 = vsel %vm712_vm6, %v1301_v53, %v1306_v39  ;;  %v2059_v49 = vld [vmem:[#allocation3 + $0x14] sm:$0xf0]  ;;  %v1977_v28 = vld [vmem:[#allocation3 + $0x18] sm:$0xf0]  ;;  %v1967_v53 = vld [vmem:[#allocation3] sm:$0xf] }
 0x38a   : > { %1309 = vst [vmem:[#allocation3 + $0x38] sm:$0xff] %v1307_v54  ;;  %v1378_v62 = vsel %vm604_vm15, %v1376_v61, %v1377_v60  ;;  %v1976_v29 = vor.u32 %v2059_v49, %v1975_v35  ;;  %v1980_v31 = vor.u32 %v2057_v6, %v1977_v28  ;;  %v2033_v61 = vld [vmem:[%s2272_s26 + $0x8] sm:$0xff]  ;;  %v1678_v54 = vpop.permute.xlu2 %1677 }
 0x38b   : > { %v1379_v3 = vsel %vm795_vm5, %v1373_v58, %v1378_v62  ;;  %v2023_v5 = vld [vmem:[#allocation3 + $0x68] sm:$0xf]  ;;  %v2069_v8 = vld [vmem:[#allocation3 + $0x6c] sm:$0xf] }
 0x38c   : > { %1381 = vst [vmem:[#allocation3 + $0x58] sm:$0xff] %v1379_v3  ;;  %v2024_v41 = vor.u32 %v2071_v0, %v2023_v5  ;;  %v2028_v7 = vor.u32 %v2069_v8, %v2025_v34  ;;  %v1702_v3 = vunpack.c.l.bf16 %v2033_v61  ;;  %v1703_v8 = vunpack.c.h.bf16 %v2033_v61 }
 0x38d   : > { %v1237_v10 = vpop.permute.xlu0 %1236 }
 0x38e   : > { %v1239_v46 = vrot.slane %v1237_v10, 4  ;;  %1652 = vmatpush.bf16.msrb.mxu2 %v2024_v41  ;;  %1665 = vmatpush.bf16.msrb.mxu3 %v2028_v7  ;;  %v1694_v10 = vld [vmem:[%s2272_s26] sm:$0xff] }
 0x38f   : > { %v1257_v14 = vpop.permute.xlu1 %1256 }
 0x390   : > { %v1240_v15 = vsel %vm604_vm15, %v1238_v33, %v1239_v46  ;;  %v1260_v11 = vrot.slane %v1257_v14, 4 }
 0x391   : > { %v1241_v18 = vsel %vm656_vm10, %v1235_v1, %v1240_v15  ;;  %v2063_v22 = vld [vmem:[#allocation3 + $0x34] sm:$0xf0]  ;;  %v1993_v16 = vld [vmem:[#allocation3 + $0x38] sm:$0xf0] }
 0x392   : > { %1243 = vst [vmem:[#allocation3 + $0x20] sm:$0xff] %v1241_v18  ;;  %v1262_v55 = vsel %vm604_vm15, %v1260_v11, %v1261_v25  ;;  %v1695_v11 = vunpack.c.l.bf16 %v1694_v10 }
 0x393   : > { %v1263_v20 = vsel %vm656_vm10, %v1257_v14, %v1262_v55  ;;  %v2067_v45 = vld [vmem:[#allocation3 + $0x54] sm:$0xf0]  ;;  %v2009_v59 = vld [vmem:[#allocation3 + $0x58] sm:$0xf0]  ;;  %v1696_v55 = vunpack.c.h.bf16 %v1694_v10 }
 0x394   : > { %1265 = vst [vmem:[#allocation3 + $0x28] sm:$0xff] %v1263_v20  ;;  %v2008_v47 = vor.u32 %v2067_v45, %v2007_v19  ;;  %v2012_v30 = vor.u32 %v2065_v21, %v2009_v59 }
 0x395   : > { %v1199_v48 = vpop.permute.xlu0 %1198 }
 0x396   : > { %1653 = vmatpush.bf16.msrb.mxu2 %v2008_v47  ;;  %1666 = vmatpush.bf16.msrb.mxu3 %v2012_v30  ;;  %v1202_v12 = vrot.slane %v1199_v48, 4 }
 0x397   : > { %v1279_v57 = vpop.permute.xlu1 %1278 }
 0x398   : > { %v1282_v24 = vrot.slane %v1279_v57, 4 }
 0x399   : > { %v1983_v37 = vld [vmem:[#allocation3 + $0x20] sm:$0xf]  ;;  %v2060_v52 = vld [vmem:[#allocation3 + $0x24] sm:$0xf] }
 0x39a   : > { %v1284_v50 = vsel %vm604_vm15, %v1282_v24, %v1283_v23 }
 0x39b   : > { %v1285_v26 = vsel %vm712_vm6, %v1279_v57, %v1284_v50  ;;  %v1991_v2 = vld [vmem:[#allocation3 + $0x28] sm:$0xf]  ;;  %v2061_v9 = vld [vmem:[#allocation3 + $0x2c] sm:$0xf] }
 0x39c   : > { %1287 = vst [vmem:[#allocation3 + $0x30] sm:$0xff] %v1285_v26  ;;  %v1992_v17 = vor.u32 %v2063_v22, %v1991_v2  ;;  %v1996_v27 = vor.u32 %v2061_v9, %v1993_v16 }
 0x39d   : > { %v1688_v34 = vpop.permute.xlu0 %1687 }
 0x39e   : > { %1654 = vmatpush.bf16.msrb.mxu2 %v1992_v17  ;;  %1667 = vmatpush.bf16.msrb.mxu3 %v1996_v27 }
 0x39f   : > { %v1201_v63 = vpop.permute.xlu1 %1200 }
 0x3a0   : > { %v1203_v13 = vrot.slane %v1201_v63, 4 }
 0x3a2   : > { %v1204_v32 = vsel %vm604_vm15, %v1202_v12, %v1203_v13  ;;  %1655 = vmatpush.bf16.msrb.mxu2 %v1976_v29  ;;  %1668 = vmatpush.bf16.msrb.mxu3 %v1980_v31 }
 0x3a3   : > { %v1205_v38 = vsel %vm606_vm1, %v1199_v48, %v1204_v32  ;;  %v2062_v42 = vld [vmem:[#allocation3 + $0x2c] sm:$0xf0]  ;;  %v1985_v43 = vld [vmem:[#allocation3 + $0x30] sm:$0xf0] }
 0x3a4   : > { %1207 = vst [vmem:[#allocation3 + $0x10] sm:$0xff] %v1205_v38  ;;  %v1984_v4 = vor.u32 %v2062_v42, %v1983_v37  ;;  %v1988_v44 = vor.u32 %v2060_v52, %v1985_v43 }
 0x3a5   : > { %2031 = vmatmul.msk.bf16.vlgmr.msrb.gmra.mxu2 %vm1067_vm11, %v1498_v36  ;;  %2032 = vmatmul.msk.bf16.vlgmr.msrb.gmra.mxu3 %vm1067_vm11, %v1498_v36 }
 0x3a6   : > { %1628 = vmatpush.bf16.msrb.mxu0 %v1984_v4  ;;  %1641 = vmatpush.bf16.msrb.mxu1 %v1988_v44 }
 0x3ab   : > { %v2058_v51 = vld [vmem:[#allocation3 + $0xc] sm:$0xf0]  ;;  %v1969_v58 = vld [vmem:[#allocation3 + $0x10] sm:$0xf0] }
 0x3ac   : > { %v1968_v60 = vor.u32 %v2058_v51, %v1967_v53  ;;  %v1972_v39 = vor.u32 %v2056_v56, %v1969_v58 }
 0x3ae   : > { %1629 = vmatpush.bf16.msrb.mxu0 %v1968_v60  ;;  %1642 = vmatpush.bf16.msrb.mxu1 %v1972_v39 }
 0x3b1   : > { %2029 = vmatmul.msk.bf16.vlgmr.msrb.gmra.mxu0 %vm1067_vm11, %v1498_v36  ;;  %2030 = vmatmul.msk.bf16.vlgmr.msrb.gmra.mxu1 %vm1067_vm11, %v1498_v36 }
 0x428   : > { %v1657_v62 = vpop.f32.mrf.mxu2  ;;  %v1670_v0 = vpop.f32.mrf.mxu3 }
 0x429   : > { %v1682_v1 = vmul.f32 %v1678_v54, %v1657_v62  ;;  %v1683_v5 = vmul.f32 %v1678_v54, %v1670_v0 }
 0x42b   : > { %v1692_v41 = vadd.f32 %v1688_v34, %v1682_v1  ;;  %v1693_v7 = vadd.f32 %v1688_v34, %v1683_v5 }
 0x42d   : > { %v1704_v33 = vadd.f32 %v1702_v3, %v1692_v41  ;;  %v1705_v46 = vadd.f32 %v1703_v8, %v1693_v7 }
 0x42e   : > { %v1631_v14 = vpop.f32.mrf.mxu0  ;;  %v1644_v25 = vpop.f32.mrf.mxu1 }
 0x42f   : > { %2034 = vst [vmem:[%s477_s25 + $0x10] sm:$0xff] %v1704_v33  ;;  %v1680_v15 = vmul.f32 %v1678_v54, %v1631_v14  ;;  %v1681_v18 = vmul.f32 %v1678_v54, %v1644_v25 }
 0x430   : > { %2035 = vst [vmem:[%s477_s25 + $0x18] sm:$0xff] %v1705_v46  ;;  %v1659_v19 = vpop.f32.mrf.mxu2  ;;  %v1672_v20 = vpop.f32.mrf.mxu3 }
 0x431   : > { %v1690_v45 = vadd.f32 %v1688_v34, %v1680_v15  ;;  %v1691_v21 = vadd.f32 %v1688_v34, %v1681_v18 }
 0x433   : > { %v1697_v59 = vadd.f32 %v1695_v11, %v1690_v45  ;;  %v1698_v47 = vadd.f32 %v1696_v55, %v1691_v21 }
 0x435   : > { %1699 = vst [vmem:[%s477_s25] sm:$0xff] %v1697_v59 }
 0x436   : > { %1700 = vst [vmem:[%s477_s25 + $0x8] sm:$0xff] %v1698_v47  ;;  %v1633_v30 = vpop.f32.mrf.mxu0  ;;  %v1646_v40 = vpop.f32.mrf.mxu1 }
 0x437 PF: > { %s19_s11 = sadd.s32 1, %s2161_s11   ;;  %s2718_s30 = smov %s2157_s10 }
 0x438   : > { %p16_p5 = scmp.ge.s32.totalorder %s19_s11, 4   ;;  %s2719_s10 = smov %s2721_s12 }
 0x43a   :  { %18 = sbr.rel (!%p16_p5) target bundleno = 2 (0x2), region = 106 }

</bundles_post_ra>
